<compile_context>
chip_gen: v6e
topology: v6e:2x2x1
jax: 0.10.0
libtpu: 0.0.40
codegen_flags: <defaults>
</compile_context>

<pallas_src>
import functools

import numpy as np
import jax
import jax.numpy as jnp
from jax import lax
from jax.experimental import pallas as pl
from jax.experimental.pallas import tpu as pltpu

# MXU input dtype; accumulation is always float32.  Set to jnp.float32 for bit-closer numerics.
MXU_DTYPE = jnp.bfloat16


def _device_kind():
    try:
        return jax.devices()[0].device_kind.lower()
    except Exception:
        return ""


_KIND = _device_kind()
_HAS_BF16_EUP = ("v6" in _KIND) or ("v7" in _KIND)
# bf16 exp only where the EUP supports it and we are on the bf16 MXU path.
_EXP_DTYPE = jnp.bfloat16 if (_HAS_BF16_EUP and MXU_DTYPE == jnp.bfloat16) else jnp.float32


def _vmem_limit_bytes():
    """Scoped-VMEM limit: physical capacity minus headroom (handles v5e 16MiB / v7x 64MiB defaults)."""
    try:
        cap = int(pltpu.get_tpu_info().vmem_capacity_bytes)
        return max(32 << 20, min(cap - (16 << 20), 100 << 20))
    except Exception:
        return 64 << 20


_VMEM_LIMIT = _vmem_limit_bytes()


def _cparams(sem):
    return pltpu.CompilerParams(dimension_semantics=sem, vmem_limit_bytes=_VMEM_LIMIT)


# Tile-size preference lists (largest first); entries respect the (8, 128) layout rules.  If
# nothing divides the dimension we fall back to the full extent (always legal).
_TM_PREFS = (256, 128, 64, 32, 16, 8)          # token (sublane) tiles
_TN_PREFS = (1024, 512, 384, 256, 128)         # output lane tiles (multiples of 128)
_TK_PREFS = (512, 256, 128)                    # contraction tiles
_TKV_PREFS = (512, 256, 128)                   # attention KV tiles (capped at 512 for v7x VMEM)
_TQ_PROBS_PREFS = (128, 64, 32, 16, 8)         # Lq tiles for the return_attns path


def _pick_tile(dim, prefs):
    for p in prefs:
        if p <= dim and dim % p == 0:
            return p
    return dim


# ------------------------------------------------------------------------------------ kernels

def _matmul_kernel(x_ref, w_ref, *rest, relu, has_bias):
    """Tiled matmul, optional bias + ReLU epilogue.  grid = (Mt, Nt, Kt)."""
    if has_bias:
        b_ref, o_ref, acc_ref = rest
    else:
        o_ref, acc_ref = rest
        b_ref = None

    k = pl.program_id(2)

    @pl.when(k == 0)
    def _():
        acc_ref[...] = jnp.zeros_like(acc_ref)

    acc_ref[...] += jnp.dot(x_ref[...].astype(w_ref.dtype), w_ref[...],
                            preferred_element_type=jnp.float32)

    @pl.when(k == pl.num_programs(2) - 1)
    def _():
        y = acc_ref[...]
        if has_bias:
            y = y + b_ref[...]
        if relu:
            y = jnp.maximum(y, 0.0)
        o_ref[...] = y.astype(o_ref.dtype)


def _matmul_add_ln_kernel(x_ref, w_ref, *rest, eps, has_bias):
    """Tiled matmul with fused (bias) + residual-add + LayerNorm epilogue.
    grid = (Mt, Kt); the feature axis stays resident so LayerNorm sees the full row."""
    if has_bias:
        b_ref, r_ref, g_ref, bt_ref, o_ref, acc_ref = rest
    else:
        r_ref, g_ref, bt_ref, o_ref, acc_ref = rest
        b_ref = None

    k = pl.program_id(1)

    @pl.when(k == 0)
    def _():
        acc_ref[...] = jnp.zeros_like(acc_ref)

    acc_ref[...] += jnp.dot(x_ref[...].astype(w_ref.dtype), w_ref[...],
                            preferred_element_type=jnp.float32)

    @pl.when(k == pl.num_programs(1) - 1)
    def _():
        y = acc_ref[...]
        if has_bias:
            y = y + b_ref[...]
        y = y + r_ref[...]                                        # residual (identity dropout)
        mu = jnp.mean(y, axis=-1, keepdims=True)
        var = jnp.mean((y - mu) ** 2, axis=-1, keepdims=True)
        xn = (y - mu) * lax.rsqrt(var + eps)
        o_ref[...] = (xn * g_ref[...] + bt_ref[...]).astype(o_ref.dtype)


def _embed_pos_ln_kernel(x_ref, w_ref, b_ref, pos_ref, g_ref, bt_ref, o_ref, *, eps):
    """Embedding Linear + bias + ReLU, + positional encoding, + LayerNorm.  grid = (B, Lt)."""
    y = jnp.dot(x_ref[0].astype(w_ref.dtype), w_ref[...],
                preferred_element_type=jnp.float32)
    y = jnp.maximum(y + b_ref[...], 0.0)        # Linear -> Dropout(identity) -> ReLU
    y = y + pos_ref[...]                        # positional table, indexed only by the L tile
    mu = jnp.mean(y, axis=-1, keepdims=True)
    var = jnp.mean((y - mu) ** 2, axis=-1, keepdims=True)
    o_ref[0] = ((y - mu) * lax.rsqrt(var + eps)) * g_ref[...] + bt_ref[...]


def _mha_online_kernel(q_ref, k_ref, v_ref, o_ref, m_sc, l_sc, acc_sc, *,
                       heads, d_k, d_v, temperature, exp_dtype, kv_axis):
    """Online-softmax attention over a KV-tiled grid.

    heads == 1      : the grid carries a head axis, blocks are per-head and lane-aligned.
    heads == n_head : all heads handled in one grid step via a static head loop."""
    kv = pl.program_id(kv_axis)

    @pl.when(kv == 0)
    def _():
        m_sc[...] = jnp.full_like(m_sc, -jnp.inf)
        l_sc[...] = jnp.zeros_like(l_sc)
        acc_sc[...] = jnp.zeros_like(acc_sc)

    inv_t = 1.0 / temperature
    # Hoisted casts (no-ops when the producer already emitted bf16).
    q_all = q_ref[0].astype(MXU_DTYPE)          # (tq,  heads*d_k)
    k_all = k_ref[0].astype(MXU_DTYPE)          # (tkv, heads*d_k)
    v_all = v_ref[0].astype(MXU_DTYPE)          # (tkv, heads*d_v)

    for h in range(heads):                      # static unroll
        if heads == 1:
            q, k, v = q_all, k_all, v_all
        else:
            q = q_all[:, h * d_k:(h + 1) * d_k]
            k = k_all[:, h * d_k:(h + 1) * d_k]
            v = v_all[:, h * d_v:(h + 1) * d_v]
        # Contract last axes directly: no XLU transpose of the K tile.
        s = lax.dot_general(q, k, (((1,), (1,)), ((), ())),
                            preferred_element_type=jnp.float32) * inv_t      # (tq, tkv)
        m_prev = m_sc[h]
        m_new = jnp.maximum(m_prev, jnp.max(s, axis=-1, keepdims=True))
        alpha = jnp.exp(m_prev - m_new)
        p = jnp.exp((s - m_new).astype(exp_dtype))                           # EUP (bf16 on v6e/v7x)
        l_sc[h] = alpha * l_sc[h] + jnp.sum(p, axis=-1, keepdims=True, dtype=jnp.float32)
        pv = lax.dot_general(p.astype(MXU_DTYPE), v, (((1,), (0,)), ((), ())),
                             preferred_element_type=jnp.float32)             # (tq, d_v)
        acc_sc[h] = alpha * acc_sc[h] + pv                                   # leading-axis index
        m_sc[h] = m_new

    @pl.when(kv == pl.num_programs(kv_axis) - 1)
    def _():
        for h in range(heads):
            inv_l = pl.reciprocal(l_sc[h], approx=True)                      # EUP reciprocal
            out = (acc_sc[h] * inv_l).astype(o_ref.dtype)
            if heads == 1:
                o_ref[0] = out
            else:
                o_ref[0, :, h * d_v:(h + 1) * d_v] = out


def _mha_probs_kernel(q_ref, k_ref, v_ref, o_ref, a_ref, *, n_head, d_k, d_v, temperature):
    """Attention that also emits the attention probabilities (return_attns=True).
    grid = (B, Lq_t); scores live only as a (tq, L) tile per head.  Exact softmax divide."""
    inv_t = 1.0 / temperature
    q_all = q_ref[0].astype(MXU_DTYPE)          # (tq, H*d_k)
    k_all = k_ref[0].astype(MXU_DTYPE)          # (L,  H*d_k)
    v_all = v_ref[0].astype(MXU_DTYPE)          # (L,  H*d_v)
    for h in range(n_head):
        q = q_all[:, h * d_k:(h + 1) * d_k]
        k = k_all[:, h * d_k:(h + 1) * d_k]
        v = v_all[:, h * d_v:(h + 1) * d_v]
        s = lax.dot_general(q, k, (((1,), (1,)), ((), ())),
                            preferred_element_type=jnp.float32) * inv_t      # (tq, L)
        s = s - jnp.max(s, axis=-1, keepdims=True)
        e = jnp.exp(s)
        p = e / jnp.sum(e, axis=-1, keepdims=True)                           # exact (maps returned)
        a_ref[0, h] = p
        o_ref[0, :, h * d_v:(h + 1) * d_v] = lax.dot_general(
            p.astype(MXU_DTYPE), v, (((1,), (0,)), ((), ())),
            preferred_element_type=jnp.float32).astype(o_ref.dtype)


# ------------------------------------------------------------------------------------ wrappers

def matmul_pallas(x, w, b=None, relu=False, out_dtype=jnp.float32):
    """x:(M,K) @ w:(K,N) [+ b] [+ ReLU], tiled + pipelined, bf16 MXU inputs, f32 accumulate."""
    M, K = x.shape
    N = w.shape[1]
    tm, tn, tk = _pick_tile(M, _TM_PREFS), _pick_tile(N, _TN_PREFS), _pick_tile(K, _TK_PREFS)
    grid = (M // tm, N // tn, K // tk)

    w = w.astype(MXU_DTYPE)                        # no-op when weights are pre-cast at init
    kern = functools.partial(_matmul_kernel, relu=relu, has_bias=b is not None)

    in_specs = [pl.BlockSpec((tm, tk), lambda m, n, k: (m, k)),
                pl.BlockSpec((tk, tn), lambda m, n, k: (k, n))]
    inputs = [x, w]
    if b is not None:
        in_specs.append(pl.BlockSpec((1, tn), lambda m, n, k: (0, n)))   # constant across m,k
        inputs.append(b.reshape(1, N))

    return pl.pallas_call(
        kern, grid=grid,
        in_specs=in_specs,
        out_specs=pl.BlockSpec((tm, tn), lambda m, n, k: (m, n)),
        out_shape=jax.ShapeDtypeStruct((M, N), out_dtype),
        scratch_shapes=[pltpu.VMEM((tm, tn), jnp.float32)],
        compiler_params=_cparams(("parallel", "parallel", "arbitrary")),
    )(*inputs)


def matmul_add_ln_pallas(x, w, b, residual, gamma, beta, eps=1e-6):
    """LayerNorm(x @ w [+ b] + residual), fused.  N stays full-width (LayerNorm row)."""
    M, K = x.shape
    N = w.shape[1]
    # Tighter tiles for very wide d_model so the full-N-resident buffers fit 64 MiB (v7x).
    tm_prefs = _TM_PREFS if N < 2048 else tuple(p for p in _TM_PREFS if p <= 128)
    tk_prefs = _TK_PREFS if N < 2048 else tuple(p for p in _TK_PREFS if p <= 256)
    tm, tk = _pick_tile(M, tm_prefs), _pick_tile(K, tk_prefs)
    grid = (M // tm, K // tk)

    w = w.astype(MXU_DTYPE)
    kern = functools.partial(_matmul_add_ln_kernel, eps=eps, has_bias=b is not None)

    in_specs = [pl.BlockSpec((tm, tk), lambda m, k: (m, k)),
                pl.BlockSpec((tk, N), lambda m, k: (k, 0))]
    inputs = [x, w]
    if b is not None:
        in_specs.append(pl.BlockSpec((1, N), lambda m, k: (0, 0)))
        inputs.append(b.reshape(1, N))
    in_specs += [pl.BlockSpec((tm, N), lambda m, k: (m, 0)),     # residual (same block over k)
                 pl.BlockSpec((1, N), lambda m, k: (0, 0)),      # gamma
                 pl.BlockSpec((1, N), lambda m, k: (0, 0))]      # beta
    inputs += [residual, gamma.reshape(1, N), beta.reshape(1, N)]

    return pl.pallas_call(
        kern, grid=grid,
        in_specs=in_specs,
        out_specs=pl.BlockSpec((tm, N), lambda m, k: (m, 0)),
        out_shape=jax.ShapeDtypeStruct((M, N), jnp.float32),
        scratch_shapes=[pltpu.VMEM((tm, N), jnp.float32)],
        compiler_params=_cparams(("parallel", "arbitrary")),
    )(*inputs)


def embed_pos_ln_pallas(x, w, b, pos, gamma, beta, eps=1e-6):
    """Fused: ReLU(x @ w + b) + pos_table -> LayerNorm.  x:(B,L,d_src), pos:(L,d_model)."""
    B, L, d_src = x.shape
    d_model = w.shape[1]
    tl = _pick_tile(L, _TM_PREFS)
    grid = (B, L // tl)

    w = w.astype(MXU_DTYPE)
    kern = functools.partial(_embed_pos_ln_kernel, eps=eps)
    return pl.pallas_call(
        kern, grid=grid,
        in_specs=[
            pl.BlockSpec((1, tl, d_src), lambda bi, li: (bi, li, 0)),
            pl.BlockSpec((d_src, d_model), lambda bi, li: (0, 0)),
            pl.BlockSpec((1, d_model), lambda bi, li: (0, 0)),
            pl.BlockSpec((tl, d_model), lambda bi, li: (li, 0)),    # pos indexed by L only
            pl.BlockSpec((1, d_model), lambda bi, li: (0, 0)),
            pl.BlockSpec((1, d_model), lambda bi, li: (0, 0)),
        ],
        out_specs=pl.BlockSpec((1, tl, d_model), lambda bi, li: (bi, li, 0)),
        out_shape=jax.ShapeDtypeStruct((B, L, d_model), jnp.float32),
        compiler_params=_cparams(("parallel", "parallel")),
    )(x, w, b.reshape(1, d_model), pos, gamma.reshape(1, d_model), beta.reshape(1, d_model))


def attention_pallas(qkv, n_head, d_k, d_v, temperature):
    """Flash-style MHA.  qkv: (B, L, H*dk + H*dk + H*dv) -> (B, L, H*dv) in MXU_DTYPE."""
    B, L, _ = qkv.shape
    hdk, hdv = n_head * d_k, n_head * d_v
    tq = _pick_tile(L, _TM_PREFS)
    tkv = _pick_tile(L, _TKV_PREFS)

    head_grid = (d_k % 128 == 0) and (d_v == d_k)
    zero_copy = (hdk % 128 == 0) and (hdv == hdk)

    if head_grid:
        # One head per grid step; every block is a lane-aligned per-head column slab of qkv.
        heads, kv_axis = 1, 3
        grid = (B, n_head, L // tq, L // tkv)
        inputs = (qkv, qkv, qkv)
        q_spec = pl.BlockSpec((1, tq, d_k), lambda b, h, qi, kv: (b, qi, h))
        k_spec = pl.BlockSpec((1, tkv, d_k), lambda b, h, qi, kv: (b, kv, n_head + h))
        v_spec = pl.BlockSpec((1, tkv, d_v), lambda b, h, qi, kv: (b, kv, 2 * n_head + h))
        o_spec = pl.BlockSpec((1, tq, d_v), lambda b, h, qi, kv: (b, qi, h))
        sem = ("parallel", "parallel", "parallel", "arbitrary")
    else:
        heads, kv_axis = n_head, 2
        grid = (B, L // tq, L // tkv)
        if zero_copy:
            inputs = (qkv, qkv, qkv)
            q_spec = pl.BlockSpec((1, tq, hdk), lambda b, qi, kv: (b, qi, 0))
            k_spec = pl.BlockSpec((1, tkv, hdk), lambda b, qi, kv: (b, kv, 1))
            v_spec = pl.BlockSpec((1, tkv, hdv), lambda b, qi, kv: (b, kv, 2))
        else:
            inputs = (qkv[..., :hdk], qkv[..., hdk:2 * hdk], qkv[..., 2 * hdk:])
            q_spec = pl.BlockSpec((1, tq, hdk), lambda b, qi, kv: (b, qi, 0))
            k_spec = pl.BlockSpec((1, tkv, hdk), lambda b, qi, kv: (b, kv, 0))
            v_spec = pl.BlockSpec((1, tkv, hdv), lambda b, qi, kv: (b, kv, 0))
        o_spec = pl.BlockSpec((1, tq, hdv), lambda b, qi, kv: (b, qi, 0))
        sem = ("parallel", "parallel", "arbitrary")

    kern = functools.partial(_mha_online_kernel, heads=heads, d_k=d_k, d_v=d_v,
                             temperature=temperature, exp_dtype=_EXP_DTYPE, kv_axis=kv_axis)
    return pl.pallas_call(
        kern, grid=grid,
        in_specs=[q_spec, k_spec, v_spec],
        out_specs=o_spec,
        out_shape=jax.ShapeDtypeStruct((B, L, hdv), MXU_DTYPE),   # feeds the fc matmul
        scratch_shapes=[
            pltpu.VMEM((heads, tq, 1), jnp.float32),   # running max
            pltpu.VMEM((heads, tq, 1), jnp.float32),   # running denominator
            pltpu.VMEM((heads, tq, d_v), jnp.float32),  # running numerator (leading head axis)
        ],
        compiler_params=_cparams(sem),
    )(*inputs)


def attention_with_probs_pallas(qkv, n_head, d_k, d_v, temperature):
    """MHA that also returns the (B, H, L, L) attention maps, tiled over (B, Lq)."""
    B, L, _ = qkv.shape
    hdk, hdv = n_head * d_k, n_head * d_v
    tq = _pick_tile(L, _TQ_PROBS_PREFS)
    zero_copy = (hdk % 128 == 0) and (hdv == hdk)

    if zero_copy:
        inputs = (qkv, qkv, qkv)
        q_spec = pl.BlockSpec((1, tq, hdk), lambda b, qi: (b, qi, 0))
        k_spec = pl.BlockSpec((1, L, hdk), lambda b, qi: (b, 0, 1))
        v_spec = pl.BlockSpec((1, L, hdv), lambda b, qi: (b, 0, 2))
    else:
        inputs = (qkv[..., :hdk], qkv[..., hdk:2 * hdk], qkv[..., 2 * hdk:])
        q_spec = pl.BlockSpec((1, tq, hdk), lambda b, qi: (b, qi, 0))
        k_spec = pl.BlockSpec((1, L, hdk), lambda b, qi: (b, 0, 0))
        v_spec = pl.BlockSpec((1, L, hdv), lambda b, qi: (b, 0, 0))

    kern = functools.partial(_mha_probs_kernel, n_head=n_head, d_k=d_k, d_v=d_v,
                             temperature=temperature)
    out, attn = pl.pallas_call(
        kern, grid=(B, L // tq),
        in_specs=[q_spec, k_spec, v_spec],
        out_specs=[
            pl.BlockSpec((1, tq, hdv), lambda b, qi: (b, qi, 0)),
            pl.BlockSpec((1, n_head, tq, L), lambda b, qi: (b, 0, qi, 0)),
        ],
        out_shape=(
            jax.ShapeDtypeStruct((B, L, hdv), MXU_DTYPE),
            jax.ShapeDtypeStruct((B, n_head, L, L), jnp.float32),
        ),
        compiler_params=_cparams(("parallel", "parallel")),
    )(*inputs)
    return out, attn


# ------------------------------------------------------------------------------------ model glue

def sinusoid_table(n_position, d_hid):
    pos = np.arange(n_position)[:, None].astype(np.float64)
    j = np.arange(d_hid)[None, :]
    angle = pos / np.power(10000.0, 2.0 * (j // 2) / d_hid)
    table = np.zeros((n_position, d_hid), dtype=np.float64)
    table[:, 0::2] = np.sin(angle[:, 0::2])
    table[:, 1::2] = np.cos(angle[:, 1::2])
    return jnp.asarray(table, dtype=jnp.float32)


def init_params(key, d_src, d_hidden, n_layers, n_head):
    d_model = d_k = d_v = d_inner = d_hidden

    def w(k, shape, scale=0.1, dtype=MXU_DTYPE):
        # MXU weights stored in bf16 once (no per-step cast); biases / LN params stay f32.
        return (scale * jax.random.normal(k, shape, dtype=jnp.float32)).astype(dtype)

    keys = jax.random.split(key, 1 + n_layers)
    ke = jax.random.split(keys[0], 2)
    params = {
        "emb_w": w(ke[0], (d_src, d_hidden)),
        "emb_b": w(ke[1], (d_hidden,), dtype=jnp.float32),
        "ln0_g": jnp.ones((d_model,), jnp.float32),
        "ln0_b": jnp.zeros((d_model,), jnp.float32),
        "layers": [],
    }
    for li in range(n_layers):
        lk = jax.random.split(keys[1 + li], 6)
        params["layers"].append({
            # Concatenation [w_qs | w_ks | w_vs] of the torch module's bias-free projections.
            "w_qkv": w(lk[0], (d_model, n_head * (2 * d_k + d_v))),
            "fc":    w(lk[1], (n_head * d_v, d_model)),
            "ln1_g": jnp.ones((d_model,), jnp.float32),
            "ln1_b": jnp.zeros((d_model,), jnp.float32),
            "w1": w(lk[2], (d_model, d_inner)),
            "b1": w(lk[3], (d_inner,), dtype=jnp.float32),
            "w2": w(lk[4], (d_inner, d_model)),
            "b2": w(lk[5], (d_model,), dtype=jnp.float32),
            "ln2_g": jnp.ones((d_model,), jnp.float32),
            "ln2_b": jnp.zeros((d_model,), jnp.float32),
        })
    return params


def stander_encoder_forward(params, src_seq, *, n_head, d_hidden,
                            n_position=500, return_attns=False):
    """src_seq: (B, L, d_src) -> (B, L, d_hidden) [, list of (B, H, L, L) attention maps]."""
    B, L, d_src = src_seq.shape
    d_model = d_k = d_v = d_hidden
    temperature = float(d_k) ** 0.5

    pos = sinusoid_table(n_position, d_model)[:L]        # (L, d_model); never tiled by B

    # embedding Linear -> Dropout(id) -> ReLU, + positional encoding, + LayerNorm (one kernel)
    x = embed_pos_ln_pallas(src_seq, params["emb_w"], params["emb_b"], pos,
                            params["ln0_g"], params["ln0_b"])
    x2 = x.reshape(B * L, d_model)

    attn_list = []
    for layer in params["layers"]:
        # ---- MultiHeadAttention ----------------------------------------------------------
        residual = x2
        # fused Q|K|V projection, emitted in bf16 (only feeds MXU consumers)
        qkv = matmul_pallas(x2, layer["w_qkv"], out_dtype=MXU_DTYPE)
        qkv3 = qkv.reshape(B, L, -1)                                  # free reshape
        if return_attns:
            out, attn = attention_with_probs_pallas(qkv3, n_head, d_k, d_v, temperature)
            attn_list.append(attn)
        else:
            out = attention_pallas(qkv3, n_head, d_k, d_v, temperature)
        out2 = out.reshape(B * L, n_head * d_v)                       # already fc-ready layout
        # fc (no bias) + dropout(id) + residual + LayerNorm, fused
        x2 = matmul_add_ln_pallas(out2, layer["fc"], None, residual,
                                  layer["ln1_g"], layer["ln1_b"])

        # ---- PositionwiseFeedForward -----------------------------------------------------
        residual = x2
        h = matmul_pallas(x2, layer["w1"], layer["b1"], relu=True,
                          out_dtype=MXU_DTYPE)                        # w1 + bias + ReLU, bf16 out
        x2 = matmul_add_ln_pallas(h, layer["w2"], layer["b2"], residual,
                                  layer["ln2_g"], layer["ln2_b"])     # w2 + bias + res + LN fused

    enc = x2.reshape(B, L, d_model)
    if return_attns:
        return enc, attn_list
    return enc


# ------------------------------------------------------------------------------------ main

if __name__ == "__main__":
    key = jax.random.PRNGKey(0)
    k0, k1, k2, k3 = jax.random.split(key, 4)

    # --- config 1: d_hidden=32 -> d_k=32 (per-head-loop attention path, zero-copy QKV blocks)
    B, L, d_src, d_hidden, n_layers, n_head = 2, 8, 16, 32, 2, 4
    params1 = init_params(k0, d_src, d_hidden, n_layers, n_head)
    src1 = jax.random.normal(k1, (B, L, d_src), dtype=jnp.float32)

    fwd1 = jax.jit(functools.partial(stander_encoder_forward,
                                     n_head=n_head, d_hidden=d_hidden))
    out1 = jax.block_until_ready(fwd1(params1, src1))
    assert out1.shape == (B, L, d_hidden)
    assert bool(jnp.all(jnp.isfinite(out1)))

    fwd1a = jax.jit(functools.partial(stander_encoder_forward,
                                      n_head=n_head, d_hidden=d_hidden, return_attns=True))
    out1a, attns = fwd1a(params1, src1)
    out1a = jax.block_until_ready(out1a)
    assert out1a.shape == (B, L, d_hidden)
    assert len(attns) == n_layers and all(a.shape == (B, n_head, L, L) for a in attns)
    assert bool(jnp.all(jnp.isfinite(out1a)))
    assert all(bool(jnp.all(jnp.isfinite(a))) for a in attns)

    # --- config 2: d_hidden=128 -> d_k=128 (head-gridded, fully lane-aligned attention path)
    B2, L2, d_src2, d_hidden2, n_layers2, n_head2 = 2, 16, 8, 128, 1, 2
    params2 = init_params(k2, d_src2, d_hidden2, n_layers2, n_head2)
    src2 = jax.random.normal(k3, (B2, L2, d_src2), dtype=jnp.float32)
    fwd2 = jax.jit(functools.partial(stander_encoder_forward,
                                     n_head=n_head2, d_hidden=d_hidden2))
    out2 = jax.block_until_ready(fwd2(params2, src2))
    assert out2.shape == (B2, L2, d_hidden2)
    assert bool(jnp.all(jnp.isfinite(out2)))

    print("KERNEL_OK")
</pallas_src>

<mosaic_0001>
module attributes {stable_mosaic.version = 11 : i64} {
  func.func @_matmul_kernel(%arg0: i32, %arg1: i32, %arg2: i32, %arg3: memref<16x32xf32, #tpu.memory_space<vmem>>, %arg4: memref<32x384xbf16, #tpu.memory_space<vmem>>, %arg5: memref<16x384xbf16, #tpu.memory_space<vmem>>, %arg6: memref<16x384xf32, #tpu.memory_space<vmem>>) attributes {dimension_semantics = [#tpu.dimension_semantics<parallel>, #tpu.dimension_semantics<parallel>, #tpu.dimension_semantics<arbitrary>], iteration_bounds = array<i64: 1, 1, 1>, scalar_prefetch = 0 : i64, scratch_operands = 1 : i64, tpu.core_type = #tpu.core_type<tc>, window_params = [{transform_indices = @transform_0, window_bounds = array<i64: 16, 32>}, {transform_indices = @transform_1, window_bounds = array<i64: 32, 384>}, {transform_indices = @transform_2, window_bounds = array<i64: 16, 384>}]} {
    %c0_i32 = arith.constant 0 : i32
    %0 = arith.cmpi eq, %arg2, %c0_i32 : i32
    %1 = arith.extui %0 : i1 to i32
    %c0_i32_0 = arith.constant 0 : i32
    %2 = arith.cmpi ne, %1, %c0_i32_0 : i32
    scf.if %2 {
      %cst_10 = arith.constant 0.000000e+00 : f32
      %13 = vector.broadcast %cst_10 : f32 to vector<16x384xf32>
      %c0_11 = arith.constant 0 : index
      %c0_12 = arith.constant 0 : index
      %14 = vector.load %arg6[%c0_11, %c0_12] : memref<16x384xf32, #tpu.memory_space<vmem>>, vector<16x384xf32>
      tpu.vector_store %arg6[%c0_11, %c0_12], %13 {strides = array<i32>} : memref<16x384xf32, #tpu.memory_space<vmem>>, vector<16x384xf32>,
    } else {
    }
    %c0 = arith.constant 0 : index
    %c0_1 = arith.constant 0 : index
    %3 = vector.load %arg6[%c0, %c0_1] : memref<16x384xf32, #tpu.memory_space<vmem>>, vector<16x384xf32>
    %c0_2 = arith.constant 0 : index
    %c0_3 = arith.constant 0 : index
    %4 = vector.load %arg3[%c0_2, %c0_3] : memref<16x32xf32, #tpu.memory_space<vmem>>, vector<16x32xf32>
    %5 = arith.truncf %4 : vector<16x32xf32> to vector<16x32xbf16>
    %c0_4 = arith.constant 0 : index
    %c0_5 = arith.constant 0 : index
    %6 = vector.load %arg4[%c0_4, %c0_5] : memref<32x384xbf16, #tpu.memory_space<vmem>>, vector<32x384xbf16>
    %cst = arith.constant dense<0.000000e+00> : vector<16x384xf32>
    %7 = tpu.matmul %5, %6, %cst {dimension_numbers = #tpu.dot_dimension_numbers<[1], [0], [0], [1], [0, 0, 1, 1], [], []>} : vector<16x32xbf16>, vector<32x384xbf16>, vector<16x384xf32> -> vector<16x384xf32>
    %8 = arith.addf %3, %7 : vector<16x384xf32>
    %c0_6 = arith.constant 0 : index
    %c0_7 = arith.constant 0 : index
    %9 = vector.load %arg6[%c0_6, %c0_7] : memref<16x384xf32, #tpu.memory_space<vmem>>, vector<16x384xf32>
    tpu.vector_store %arg6[%c0_6, %c0_7], %8 {strides = array<i32>} : memref<16x384xf32, #tpu.memory_space<vmem>>, vector<16x384xf32>,
    %c0_i32_8 = arith.constant 0 : i32
    %10 = arith.cmpi eq, %arg2, %c0_i32_8 : i32
    %11 = arith.extui %10 : i1 to i32
    %c0_i32_9 = arith.constant 0 : i32
    %12 = arith.cmpi ne, %11, %c0_i32_9 : i32
    scf.if %12 {
      %c0_10 = arith.constant 0 : index
      %c0_11 = arith.constant 0 : index
      %13 = vector.load %arg6[%c0_10, %c0_11] : memref<16x384xf32, #tpu.memory_space<vmem>>, vector<16x384xf32>
      %14 = arith.truncf %13 : vector<16x384xf32> to vector<16x384xbf16>
      %c0_12 = arith.constant 0 : index
      %c0_13 = arith.constant 0 : index
      %15 = vector.load %arg5[%c0_12, %c0_13] : memref<16x384xbf16, #tpu.memory_space<vmem>>, vector<16x384xbf16>
      tpu.vector_store %arg5[%c0_12, %c0_13], %14 {strides = array<i32>} : memref<16x384xbf16, #tpu.memory_space<vmem>>, vector<16x384xbf16>,
    } else {
    }
    return
  }
  func.func @transform_0(%arg0: i32, %arg1: i32, %arg2: i32) -> (i32, i32) {
    %c0_i32 = arith.constant 0 : i32
    return %arg0, %arg2 : i32, i32
  }
  func.func @transform_1(%arg0: i32, %arg1: i32, %arg2: i32) -> (i32, i32) {
    %c0_i32 = arith.constant 0 : i32
    return %arg2, %arg1 : i32, i32
  }
  func.func @transform_2(%arg0: i32, %arg1: i32, %arg2: i32) -> (i32, i32) {
    %c0_i32 = arith.constant 0 : i32
    return %arg0, %arg1 : i32, i32
  }
}

module attributes {stable_mosaic.version = 11 : i64} {
  func.func @_embed_pos_ln_kernel(%arg0: i32, %arg1: i32, %arg2: memref<1x8x16xf32, #tpu.memory_space<vmem>>, %arg3: memref<16x32xbf16, #tpu.memory_space<vmem>>, %arg4: memref<1x32xf32, #tpu.memory_space<vmem>>, %arg5: memref<8x32xf32, #tpu.memory_space<vmem>>, %arg6: memref<1x32xf32, #tpu.memory_space<vmem>>, %arg7: memref<1x32xf32, #tpu.memory_space<vmem>>, %arg8: memref<1x8x32xf32, #tpu.memory_space<vmem>>) attributes {dimension_semantics = [#tpu.dimension_semantics<parallel>, #tpu.dimension_semantics<parallel>], iteration_bounds = array<i64: 2, 1>, scalar_prefetch = 0 : i64, scratch_operands = 0 : i64, tpu.core_type = #tpu.core_type<tc>, window_params = [{transform_indices = @transform_0, window_bounds = array<i64: 1, 8, 16>}, {pipeline_mode = #tpu.pipeline_mode<synchronous>, transform_indices = @transform_1, window_bounds = array<i64: 16, 32>}, {pipeline_mode = #tpu.pipeline_mode<synchronous>, transform_indices = @transform_2, window_bounds = array<i64: 1, 32>}, {transform_indices = @transform_3, window_bounds = array<i64: 8, 32>}, {pipeline_mode = #tpu.pipeline_mode<synchronous>, transform_indices = @transform_4, window_bounds = array<i64: 1, 32>}, {pipeline_mode = #tpu.pipeline_mode<synchronous>, transform_indices = @transform_5, window_bounds = array<i64: 1, 32>}, {transform_indices = @transform_6, window_bounds = array<i64: 1, 8, 32>}]} {
    %c0 = arith.constant 0 : index
    %c0_0 = arith.constant 0 : index
    %c0_1 = arith.constant 0 : index
    %0 = vector.load %arg2[%c0, %c0_0, %c0_1] : memref<1x8x16xf32, #tpu.memory_space<vmem>>, vector<1x8x16xf32>
    %1 = vector.shape_cast %0 : vector<1x8x16xf32> to vector<8x16xf32>
    %2 = arith.truncf %1 : vector<8x16xf32> to vector<8x16xbf16>
    %c0_2 = arith.constant 0 : index
    %c0_3 = arith.constant 0 : index
    %3 = vector.load %arg3[%c0_2, %c0_3] : memref<16x32xbf16, #tpu.memory_space<vmem>>, vector<16x32xbf16>
    %cst = arith.constant dense<0.000000e+00> : vector<8x32xf32>
    %4 = tpu.matmul %2, %3, %cst {dimension_numbers = #tpu.dot_dimension_numbers<[1], [0], [0], [1], [0, 0, 1, 1], [], []>} : vector<8x16xbf16>, vector<16x32xbf16>, vector<8x32xf32> -> vector<8x32xf32>
    %c0_4 = arith.constant 0 : index
    %c0_5 = arith.constant 0 : index
    %5 = vector.load %arg4[%c0_4, %c0_5] : memref<1x32xf32, #tpu.memory_space<vmem>>, vector<1x32xf32>
    %6 = vector.broadcast %5 : vector<1x32xf32> to vector<8x32xf32>
    %7 = arith.addf %4, %6 : vector<8x32xf32>
    %cst_6 = arith.constant 0.000000e+00 : f32
    %8 = vector.broadcast %cst_6 : f32 to vector<8x32xf32>
    %9 = arith.maximumf %7, %8 : vector<8x32xf32>
    %c0_7 = arith.constant 0 : index
    %c0_8 = arith.constant 0 : index
    %10 = vector.load %arg5[%c0_7, %c0_8] : memref<8x32xf32, #tpu.memory_space<vmem>>, vector<8x32xf32>
    %11 = arith.addf %9, %10 : vector<8x32xf32>
    %cst_9 = arith.constant dense<0.000000e+00> : vector<8xf32>
    %12 = vector.multi_reduction <add>, %11, %cst_9 [1] : vector<8x32xf32> to vector<8xf32>
    %13 = vector.shape_cast %12 : vector<8xf32> to vector<8x1xf32>
    %cst_10 = arith.constant 3.200000e+01 : f32
    %14 = vector.broadcast %cst_10 : f32 to vector<8x1xf32>
    %15 = arith.divf %13, %14 : vector<8x1xf32>
    %16 = vector.broadcast %15 : vector<8x1xf32> to vector<8x32xf32>
    %17 = arith.subf %11, %16 : vector<8x32xf32>
    %18 = arith.mulf %17, %17 : vector<8x32xf32>
    %cst_11 = arith.constant dense<0.000000e+00> : vector<8xf32>
    %19 = vector.multi_reduction <add>, %18, %cst_11 [1] : vector<8x32xf32> to vector<8xf32>
    %20 = vector.shape_cast %19 : vector<8xf32> to vector<8x1xf32>
    %cst_12 = arith.constant 3.200000e+01 : f32
    %21 = vector.broadcast %cst_12 : f32 to vector<8x1xf32>
    %22 = arith.divf %20, %21 : vector<8x1xf32>
    %23 = vector.broadcast %15 : vector<8x1xf32> to vector<8x32xf32>
    %24 = arith.subf %11, %23 : vector<8x32xf32>
    %cst_13 = arith.constant 9.99999997E-7 : f32
    %25 = vector.broadcast %cst_13 : f32 to vector<8x1xf32>
    %26 = arith.addf %22, %25 : vector<8x1xf32>
    %27 = math.rsqrt %26 : vector<8x1xf32>
    %28 = vector.broadcast %27 : vector<8x1xf32> to vector<8x32xf32>
    %29 = arith.mulf %24, %28 : vector<8x32xf32>
    %c0_14 = arith.constant 0 : index
    %c0_15 = arith.constant 0 : index
    %30 = vector.load %arg6[%c0_14, %c0_15] : memref<1x32xf32, #tpu.memory_space<vmem>>, vector<1x32xf32>
    %31 = vector.broadcast %30 : vector<1x32xf32> to vector<8x32xf32>
    %32 = arith.mulf %29, %31 : vector<8x32xf32>
    %c0_16 = arith.constant 0 : index
    %c0_17 = arith.constant 0 : index
    %33 = vector.load %arg7[%c0_16, %c0_17] : memref<1x32xf32, #tpu.memory_space<vmem>>, vector<1x32xf32>
    %34 = vector.broadcast %33 : vector<1x32xf32> to vector<8x32xf32>
    %35 = arith.addf %32, %34 : vector<8x32xf32>
    %c0_18 = arith.constant 0 : index
    %c0_19 = arith.constant 0 : index
    %c0_20 = arith.constant 0 : index
    %36 = vector.load %arg8[%c0_18, %c0_19, %c0_20] : memref<1x8x32xf32, #tpu.memory_space<vmem>>, vector<1x8x32xf32>
    %37 = vector.shape_cast %36 : vector<1x8x32xf32> to vector<8x32xf32>
    %38 = vector.shape_cast %35 : vector<8x32xf32> to vector<1x8x32xf32>
    tpu.vector_store %arg8[%c0_18, %c0_19, %c0_20], %38 {strides = array<i32>} : memref<1x8x32xf32, #tpu.memory_space<vmem>>, vector<1x8x32xf32>,
    return
  }
  func.func @transform_0(%arg0: i32, %arg1: i32) -> (i32, i32, i32) {
    %c0_i32 = arith.constant 0 : i32
    %c0_i32_0 = arith.constant 0 : i32
    return %arg0, %arg1, %c0_i32 : i32, i32, i32
  }
  func.func @transform_1(%arg0: i32, %arg1: i32) -> (i32, i32) {
    %c0_i32 = arith.constant 0 : i32
    %c0_i32_0 = arith.constant 0 : i32
    %c0_i32_1 = arith.constant 0 : i32
    return %c0_i32, %c0_i32_0 : i32, i32
  }
  func.func @transform_2(%arg0: i32, %arg1: i32) -> (i32, i32) {
    %c0_i32 = arith.constant 0 : i32
    %c0_i32_0 = arith.constant 0 : i32
    %c0_i32_1 = arith.constant 0 : i32
    return %c0_i32, %c0_i32_0 : i32, i32
  }
  func.func @transform_3(%arg0: i32, %arg1: i32) -> (i32, i32) {
    %c0_i32 = arith.constant 0 : i32
    %c0_i32_0 = arith.constant 0 : i32
    return %arg1, %c0_i32 : i32, i32
  }
  func.func @transform_4(%arg0: i32, %arg1: i32) -> (i32, i32) {
    %c0_i32 = arith.constant 0 : i32
    %c0_i32_0 = arith.constant 0 : i32
    %c0_i32_1 = arith.constant 0 : i32
    return %c0_i32, %c0_i32_0 : i32, i32
  }
  func.func @transform_5(%arg0: i32, %arg1: i32) -> (i32, i32) {
    %c0_i32 = arith.constant 0 : i32
    %c0_i32_0 = arith.constant 0 : i32
    %c0_i32_1 = arith.constant 0 : i32
    return %c0_i32, %c0_i32_0 : i32, i32
  }
  func.func @transform_6(%arg0: i32, %arg1: i32) -> (i32, i32, i32) {
    %c0_i32 = arith.constant 0 : i32
    %c0_i32_0 = arith.constant 0 : i32
    return %arg0, %arg1, %c0_i32 : i32, i32, i32
  }
}

module attributes {stable_mosaic.version = 11 : i64} {
  func.func @_mha_online_kernel(%arg0: i32, %arg1: i32, %arg2: i32, %arg3: memref<1x8x128xbf16, #tpu.memory_space<vmem>>, %arg4: memref<1x8x128xbf16, #tpu.memory_space<vmem>>, %arg5: memref<1x8x128xbf16, #tpu.memory_space<vmem>>, %arg6: memref<1x8x128xbf16, #tpu.memory_space<vmem>>, %arg7: memref<4x8x1xf32, #tpu.memory_space<vmem>>, %arg8: memref<4x8x1xf32, #tpu.memory_space<vmem>>, %arg9: memref<4x8x32xf32, #tpu.memory_space<vmem>>) attributes {dimension_semantics = [#tpu.dimension_semantics<parallel>, #tpu.dimension_semantics<parallel>, #tpu.dimension_semantics<arbitrary>], iteration_bounds = array<i64: 2, 1, 1>, scalar_prefetch = 0 : i64, scratch_operands = 3 : i64, tpu.core_type = #tpu.core_type<tc>, window_params = [{transform_indices = @transform_0, window_bounds = array<i64: 1, 8, 128>}, {transform_indices = @transform_1, window_bounds = array<i64: 1, 8, 128>}, {transform_indices = @transform_2, window_bounds = array<i64: 1, 8, 128>}, {transform_indices = @transform_3, window_bounds = array<i64: 1, 8, 128>}]} {
    %c0_i32 = arith.constant 0 : i32
    %0 = arith.cmpi eq, %arg2, %c0_i32 : i32
    %1 = arith.extui %0 : i1 to i32
    %c0_i32_0 = arith.constant 0 : i32
    %2 = arith.cmpi ne, %1, %c0_i32_0 : i32
    scf.if %2 {
      %cst_99 = arith.constant 0xFF800000 : f32
      %164 = vector.broadcast %cst_99 : f32 to vector<4x8x1xf32>
      %c0_100 = arith.constant 0 : index
      %c0_101 = arith.constant 0 : index
      %c0_102 = arith.constant 0 : index
      %165 = vector.load %arg7[%c0_100, %c0_101, %c0_102] : memref<4x8x1xf32, #tpu.memory_space<vmem>>, vector<4x8x1xf32>
      tpu.vector_store %arg7[%c0_100, %c0_101, %c0_102], %164 {strides = array<i32>} : memref<4x8x1xf32, #tpu.memory_space<vmem>>, vector<4x8x1xf32>,
      %cst_103 = arith.constant 0.000000e+00 : f32
      %166 = vector.broadcast %cst_103 : f32 to vector<4x8x1xf32>
      %c0_104 = arith.constant 0 : index
      %c0_105 = arith.constant 0 : index
      %c0_106 = arith.constant 0 : index
      %167 = vector.load %arg8[%c0_104, %c0_105, %c0_106] : memref<4x8x1xf32, #tpu.memory_space<vmem>>, vector<4x8x1xf32>
      tpu.vector_store %arg8[%c0_104, %c0_105, %c0_106], %166 {strides = array<i32>} : memref<4x8x1xf32, #tpu.memory_space<vmem>>, vector<4x8x1xf32>,
      %cst_107 = arith.constant 0.000000e+00 : f32
      %168 = vector.broadcast %cst_107 : f32 to vector<4x8x32xf32>
      %c0_108 = arith.constant 0 : index
      %c0_109 = arith.constant 0 : index
      %c0_110 = arith.constant 0 : index
      %169 = vector.load %arg9[%c0_108, %c0_109, %c0_110] : memref<4x8x32xf32, #tpu.memory_space<vmem>>, vector<4x8x32xf32>
      tpu.vector_store %arg9[%c0_108, %c0_109, %c0_110], %168 {strides = array<i32>} : memref<4x8x32xf32, #tpu.memory_space<vmem>>, vector<4x8x32xf32>,
    } else {
    }
    %c0 = arith.constant 0 : index
    %c0_1 = arith.constant 0 : index
    %c0_2 = arith.constant 0 : index
    %3 = vector.load %arg3[%c0, %c0_1, %c0_2] : memref<1x8x128xbf16, #tpu.memory_space<vmem>>, vector<1x8x128xbf16>
    %4 = vector.shape_cast %3 : vector<1x8x128xbf16> to vector<8x128xbf16>
    %c0_3 = arith.constant 0 : index
    %c0_4 = arith.constant 0 : index
    %c0_5 = arith.constant 0 : index
    %5 = vector.load %arg4[%c0_3, %c0_4, %c0_5] : memref<1x8x128xbf16, #tpu.memory_space<vmem>>, vector<1x8x128xbf16>
    %6 = vector.shape_cast %5 : vector<1x8x128xbf16> to vector<8x128xbf16>
    %c0_6 = arith.constant 0 : index
    %c0_7 = arith.constant 0 : index
    %c0_8 = arith.constant 0 : index
    %7 = vector.load %arg5[%c0_6, %c0_7, %c0_8] : memref<1x8x128xbf16, #tpu.memory_space<vmem>>, vector<1x8x128xbf16>
    %8 = vector.shape_cast %7 : vector<1x8x128xbf16> to vector<8x128xbf16>
    %9 = vector.extract_strided_slice %4 {offsets = [0, 0], sizes = [8, 32], strides = [1, 1]} : vector<8x128xbf16> to vector<8x32xbf16>
    %10 = vector.extract_strided_slice %6 {offsets = [0, 0], sizes = [8, 32], strides = [1, 1]} : vector<8x128xbf16> to vector<8x32xbf16>
    %11 = vector.extract_strided_slice %8 {offsets = [0, 0], sizes = [8, 32], strides = [1, 1]} : vector<8x128xbf16> to vector<8x32xbf16>
    %cst = arith.constant dense<0.000000e+00> : vector<8x8xf32>
    %12 = tpu.matmul %9, %10, %cst {dimension_numbers = #tpu.dot_dimension_numbers<[1], [1], [0], [0], [0, 0, 1, 0], [], []>} : vector<8x32xbf16>, vector<8x32xbf16>, vector<8x8xf32> -> vector<8x8xf32>
    %cst_9 = arith.constant 0.176776692 : f32
    %13 = vector.broadcast %cst_9 : f32 to vector<8x8xf32>
    %14 = arith.mulf %12, %13 : vector<8x8xf32>
    %c0_10 = arith.constant 0 : index
    %c0_11 = arith.constant 0 : index
    %c0_12 = arith.constant 0 : index
    %15 = vector.load %arg7[%c0_10, %c0_11, %c0_12] : memref<4x8x1xf32, #tpu.memory_space<vmem>>, vector<1x8x1xf32>
    %16 = vector.shape_cast %15 : vector<1x8x1xf32> to vector<8x1xf32>
    %cst_13 = arith.constant dense<0xFF800000> : vector<8xf32>
    %17 = vector.multi_reduction <maximumf>, %14, %cst_13 [1] : vector<8x8xf32> to vector<8xf32>
    %18 = vector.shape_cast %17 : vector<8xf32> to vector<8x1xf32>
    %19 = arith.maximumf %16, %18 : vector<8x1xf32>
    %20 = arith.subf %16, %19 : vector<8x1xf32>
    %21 = math.exp %20 : vector<8x1xf32>
    %22 = vector.broadcast %19 : vector<8x1xf32> to vector<8x8xf32>
    %23 = arith.subf %14, %22 : vector<8x8xf32>
    %24 = math.exp %23 : vector<8x8xf32>
    %c0_14 = arith.constant 0 : index
    %c0_15 = arith.constant 0 : index
    %c0_16 = arith.constant 0 : index
    %25 = vector.load %arg8[%c0_14, %c0_15, %c0_16] : memref<4x8x1xf32, #tpu.memory_space<vmem>>, vector<1x8x1xf32>
    %26 = vector.shape_cast %25 : vector<1x8x1xf32> to vector<8x1xf32>
    %27 = arith.mulf %21, %26 : vector<8x1xf32>
    %cst_17 = arith.constant dense<0.000000e+00> : vector<8xf32>
    %28 = vector.multi_reduction <add>, %24, %cst_17 [1] : vector<8x8xf32> to vector<8xf32>
    %29 = vector.shape_cast %28 : vector<8xf32> to vector<8x1xf32>
    %30 = arith.addf %27, %29 : vector<8x1xf32>
    %c0_18 = arith.constant 0 : index
    %c0_19 = arith.constant 0 : index
    %c0_20 = arith.constant 0 : index
    %31 = vector.load %arg8[%c0_18, %c0_19, %c0_20] : memref<4x8x1xf32, #tpu.memory_space<vmem>>, vector<1x8x1xf32>
    %32 = vector.shape_cast %31 : vector<1x8x1xf32> to vector<8x1xf32>
    %33 = vector.shape_cast %30 : vector<8x1xf32> to vector<1x8x1xf32>
    tpu.vector_store %arg8[%c0_18, %c0_19, %c0_20], %33 {strides = array<i32>} : memref<4x8x1xf32, #tpu.memory_space<vmem>>, vector<1x8x1xf32>,
    %34 = arith.truncf %24 : vector<8x8xf32> to vector<8x8xbf16>
    %cst_21 = arith.constant dense<0.000000e+00> : vector<8x32xf32>
    %35 = tpu.matmul %34, %11, %cst_21 {dimension_numbers = #tpu.dot_dimension_numbers<[1], [0], [0], [1], [0, 0, 1, 1], [], []>} : vector<8x8xbf16>, vector<8x32xbf16>, vector<8x32xf32> -> vector<8x32xf32>
    %c0_22 = arith.constant 0 : index
    %c0_23 = arith.constant 0 : index
    %c0_24 = arith.constant 0 : index
    %36 = vector.load %arg9[%c0_22, %c0_23, %c0_24] : memref<4x8x32xf32, #tpu.memory_space<vmem>>, vector<1x8x32xf32>
    %37 = vector.shape_cast %36 : vector<1x8x32xf32> to vector<8x32xf32>
    %38 = vector.broadcast %21 : vector<8x1xf32> to vector<8x32xf32>
    %39 = arith.mulf %38, %37 : vector<8x32xf32>
    %40 = arith.addf %39, %35 : vector<8x32xf32>
    %c0_25 = arith.constant 0 : index
    %c0_26 = arith.constant 0 : index
    %c0_27 = arith.constant 0 : index
    %41 = vector.load %arg9[%c0_25, %c0_26, %c0_27] : memref<4x8x32xf32, #tpu.memory_space<vmem>>, vector<1x8x32xf32>
    %42 = vector.shape_cast %41 : vector<1x8x32xf32> to vector<8x32xf32>
    %43 = vector.shape_cast %40 : vector<8x32xf32> to vector<1x8x32xf32>
    tpu.vector_store %arg9[%c0_25, %c0_26, %c0_27], %43 {strides = array<i32>} : memref<4x8x32xf32, #tpu.memory_space<vmem>>, vector<1x8x32xf32>,
    %c0_28 = arith.constant 0 : index
    %c0_29 = arith.constant 0 : index
    %c0_30 = arith.constant 0 : index
    %44 = vector.load %arg7[%c0_28, %c0_29, %c0_30] : memref<4x8x1xf32, #tpu.memory_space<vmem>>, vector<1x8x1xf32>
    %45 = vector.shape_cast %44 : vector<1x8x1xf32> to vector<8x1xf32>
    %46 = vector.shape_cast %19 : vector<8x1xf32> to vector<1x8x1xf32>
    tpu.vector_store %arg7[%c0_28, %c0_29, %c0_30], %46 {strides = array<i32>} : memref<4x8x1xf32, #tpu.memory_space<vmem>>, vector<1x8x1xf32>,
    %47 = vector.extract_strided_slice %4 {offsets = [0, 32], sizes = [8, 32], strides = [1, 1]} : vector<8x128xbf16> to vector<8x32xbf16>
    %48 = vector.extract_strided_slice %6 {offsets = [0, 32], sizes = [8, 32], strides = [1, 1]} : vector<8x128xbf16> to vector<8x32xbf16>
    %49 = vector.extract_strided_slice %8 {offsets = [0, 32], sizes = [8, 32], strides = [1, 1]} : vector<8x128xbf16> to vector<8x32xbf16>
    %cst_31 = arith.constant dense<0.000000e+00> : vector<8x8xf32>
    %50 = tpu.matmul %47, %48, %cst_31 {dimension_numbers = #tpu.dot_dimension_numbers<[1], [1], [0], [0], [0, 0, 1, 0], [], []>} : vector<8x32xbf16>, vector<8x32xbf16>, vector<8x8xf32> -> vector<8x8xf32>
    %cst_32 = arith.constant 0.176776692 : f32
    %51 = vector.broadcast %cst_32 : f32 to vector<8x8xf32>
    %52 = arith.mulf %50, %51 : vector<8x8xf32>
    %c1 = arith.constant 1 : index
    %c0_33 = arith.constant 0 : index
    %c0_34 = arith.constant 0 : index
    %53 = vector.load %arg7[%c1, %c0_33, %c0_34] : memref<4x8x1xf32, #tpu.memory_space<vmem>>, vector<1x8x1xf32>
    %54 = vector.shape_cast %53 : vector<1x8x1xf32> to vector<8x1xf32>
    %cst_35 = arith.constant dense<0xFF800000> : vector<8xf32>
    %55 = vector.multi_reduction <maximumf>, %52, %cst_35 [1] : vector<8x8xf32> to vector<8xf32>
    %56 = vector.shape_cast %55 : vector<8xf32> to vector<8x1xf32>
    %57 = arith.maximumf %54, %56 : vector<8x1xf32>
    %58 = arith.subf %54, %57 : vector<8x1xf32>
    %59 = math.exp %58 : vector<8x1xf32>
    %60 = vector.broadcast %57 : vector<8x1xf32> to vector<8x8xf32>
    %61 = arith.subf %52, %60 : vector<8x8xf32>
    %62 = math.exp %61 : vector<8x8xf32>
    %c1_36 = arith.constant 1 : index
    %c0_37 = arith.constant 0 : index
    %c0_38 = arith.constant 0 : index
    %63 = vector.load %arg8[%c1_36, %c0_37, %c0_38] : memref<4x8x1xf32, #tpu.memory_space<vmem>>, vector<1x8x1xf32>
    %64 = vector.shape_cast %63 : vector<1x8x1xf32> to vector<8x1xf32>
    %65 = arith.mulf %59, %64 : vector<8x1xf32>
    %cst_39 = arith.constant dense<0.000000e+00> : vector<8xf32>
    %66 = vector.multi_reduction <add>, %62, %cst_39 [1] : vector<8x8xf32> to vector<8xf32>
    %67 = vector.shape_cast %66 : vector<8xf32> to vector<8x1xf32>
    %68 = arith.addf %65, %67 : vector<8x1xf32>
    %c1_40 = arith.constant 1 : index
    %c0_41 = arith.constant 0 : index
    %c0_42 = arith.constant 0 : index
    %69 = vector.load %arg8[%c1_40, %c0_41, %c0_42] : memref<4x8x1xf32, #tpu.memory_space<vmem>>, vector<1x8x1xf32>
    %70 = vector.shape_cast %69 : vector<1x8x1xf32> to vector<8x1xf32>
    %71 = vector.shape_cast %68 : vector<8x1xf32> to vector<1x8x1xf32>
    tpu.vector_store %arg8[%c1_40, %c0_41, %c0_42], %71 {strides = array<i32>} : memref<4x8x1xf32, #tpu.memory_space<vmem>>, vector<1x8x1xf32>,
    %72 = arith.truncf %62 : vector<8x8xf32> to vector<8x8xbf16>
    %cst_43 = arith.constant dense<0.000000e+00> : vector<8x32xf32>
    %73 = tpu.matmul %72, %49, %cst_43 {dimension_numbers = #tpu.dot_dimension_numbers<[1], [0], [0], [1], [0, 0, 1, 1], [], []>} : vector<8x8xbf16>, vector<8x32xbf16>, vector<8x32xf32> -> vector<8x32xf32>
    %c1_44 = arith.constant 1 : index
    %c0_45 = arith.constant 0 : index
    %c0_46 = arith.constant 0 : index
    %74 = vector.load %arg9[%c1_44, %c0_45, %c0_46] : memref<4x8x32xf32, #tpu.memory_space<vmem>>, vector<1x8x32xf32>
    %75 = vector.shape_cast %74 : vector<1x8x32xf32> to vector<8x32xf32>
    %76 = vector.broadcast %59 : vector<8x1xf32> to vector<8x32xf32>
    %77 = arith.mulf %76, %75 : vector<8x32xf32>
    %78 = arith.addf %77, %73 : vector<8x32xf32>
    %c1_47 = arith.constant 1 : index
    %c0_48 = arith.constant 0 : index
    %c0_49 = arith.constant 0 : index
    %79 = vector.load %arg9[%c1_47, %c0_48, %c0_49] : memref<4x8x32xf32, #tpu.memory_space<vmem>>, vector<1x8x32xf32>
    %80 = vector.shape_cast %79 : vector<1x8x32xf32> to vector<8x32xf32>
    %81 = vector.shape_cast %78 : vector<8x32xf32> to vector<1x8x32xf32>
    tpu.vector_store %arg9[%c1_47, %c0_48, %c0_49], %81 {strides = array<i32>} : memref<4x8x32xf32, #tpu.memory_space<vmem>>, vector<1x8x32xf32>,
    %c1_50 = arith.constant 1 : index
    %c0_51 = arith.constant 0 : index
    %c0_52 = arith.constant 0 : index
    %82 = vector.load %arg7[%c1_50, %c0_51, %c0_52] : memref<4x8x1xf32, #tpu.memory_space<vmem>>, vector<1x8x1xf32>
    %83 = vector.shape_cast %82 : vector<1x8x1xf32> to vector<8x1xf32>
    %84 = vector.shape_cast %57 : vector<8x1xf32> to vector<1x8x1xf32>
    tpu.vector_store %arg7[%c1_50, %c0_51, %c0_52], %84 {strides = array<i32>} : memref<4x8x1xf32, #tpu.memory_space<vmem>>, vector<1x8x1xf32>,
    %85 = vector.extract_strided_slice %4 {offsets = [0, 64], sizes = [8, 32], strides = [1, 1]} : vector<8x128xbf16> to vector<8x32xbf16>
    %86 = vector.extract_strided_slice %6 {offsets = [0, 64], sizes = [8, 32], strides = [1, 1]} : vector<8x128xbf16> to vector<8x32xbf16>
    %87 = vector.extract_strided_slice %8 {offsets = [0, 64], sizes = [8, 32], strides = [1, 1]} : vector<8x128xbf16> to vector<8x32xbf16>
    %cst_53 = arith.constant dense<0.000000e+00> : vector<8x8xf32>
    %88 = tpu.matmul %85, %86, %cst_53 {dimension_numbers = #tpu.dot_dimension_numbers<[1], [1], [0], [0], [0, 0, 1, 0], [], []>} : vector<8x32xbf16>, vector<8x32xbf16>, vector<8x8xf32> -> vector<8x8xf32>
    %cst_54 = arith.constant 0.176776692 : f32
    %89 = vector.broadcast %cst_54 : f32 to vector<8x8xf32>
    %90 = arith.mulf %88, %89 : vector<8x8xf32>
    %c2 = arith.constant 2 : index
    %c0_55 = arith.constant 0 : index
    %c0_56 = arith.constant 0 : index
    %91 = vector.load %arg7[%c2, %c0_55, %c0_56] : memref<4x8x1xf32, #tpu.memory_space<vmem>>, vector<1x8x1xf32>
    %92 = vector.shape_cast %91 : vector<1x8x1xf32> to vector<8x1xf32>
    %cst_57 = arith.constant dense<0xFF800000> : vector<8xf32>
    %93 = vector.multi_reduction <maximumf>, %90, %cst_57 [1] : vector<8x8xf32> to vector<8xf32>
    %94 = vector.shape_cast %93 : vector<8xf32> to vector<8x1xf32>
    %95 = arith.maximumf %92, %94 : vector<8x1xf32>
    %96 = arith.subf %92, %95 : vector<8x1xf32>
    %97 = math.exp %96 : vector<8x1xf32>
    %98 = vector.broadcast %95 : vector<8x1xf32> to vector<8x8xf32>
    %99 = arith.subf %90, %98 : vector<8x8xf32>
    %100 = math.exp %99 : vector<8x8xf32>
    %c2_58 = arith.constant 2 : index
    %c0_59 = arith.constant 0 : index
    %c0_60 = arith.constant 0 : index
    %101 = vector.load %arg8[%c2_58, %c0_59, %c0_60] : memref<4x8x1xf32, #tpu.memory_space<vmem>>, vector<1x8x1xf32>
    %102 = vector.shape_cast %101 : vector<1x8x1xf32> to vector<8x1xf32>
    %103 = arith.mulf %97, %102 : vector<8x1xf32>
    %cst_61 = arith.constant dense<0.000000e+00> : vector<8xf32>
    %104 = vector.multi_reduction <add>, %100, %cst_61 [1] : vector<8x8xf32> to vector<8xf32>
    %105 = vector.shape_cast %104 : vector<8xf32> to vector<8x1xf32>
    %106 = arith.addf %103, %105 : vector<8x1xf32>
    %c2_62 = arith.constant 2 : index
    %c0_63 = arith.constant 0 : index
    %c0_64 = arith.constant 0 : index
    %107 = vector.load %arg8[%c2_62, %c0_63, %c0_64] : memref<4x8x1xf32, #tpu.memory_space<vmem>>, vector<1x8x1xf32>
    %108 = vector.shape_cast %107 : vector<1x8x1xf32> to vector<8x1xf32>
    %109 = vector.shape_cast %106 : vector<8x1xf32> to vector<1x8x1xf32>
    tpu.vector_store %arg8[%c2_62, %c0_63, %c0_64], %109 {strides = array<i32>} : memref<4x8x1xf32, #tpu.memory_space<vmem>>, vector<1x8x1xf32>,
    %110 = arith.truncf %100 : vector<8x8xf32> to vector<8x8xbf16>
    %cst_65 = arith.constant dense<0.000000e+00> : vector<8x32xf32>
    %111 = tpu.matmul %110, %87, %cst_65 {dimension_numbers = #tpu.dot_dimension_numbers<[1], [0], [0], [1], [0, 0, 1, 1], [], []>} : vector<8x8xbf16>, vector<8x32xbf16>, vector<8x32xf32> -> vector<8x32xf32>
    %c2_66 = arith.constant 2 : index
    %c0_67 = arith.constant 0 : index
    %c0_68 = arith.constant 0 : index
    %112 = vector.load %arg9[%c2_66, %c0_67, %c0_68] : memref<4x8x32xf32, #tpu.memory_space<vmem>>, vector<1x8x32xf32>
    %113 = vector.shape_cast %112 : vector<1x8x32xf32> to vector<8x32xf32>
    %114 = vector.broadcast %97 : vector<8x1xf32> to vector<8x32xf32>
    %115 = arith.mulf %114, %113 : vector<8x32xf32>
    %116 = arith.addf %115, %111 : vector<8x32xf32>
    %c2_69 = arith.constant 2 : index
    %c0_70 = arith.constant 0 : index
    %c0_71 = arith.constant 0 : index
    %117 = vector.load %arg9[%c2_69, %c0_70, %c0_71] : memref<4x8x32xf32, #tpu.memory_space<vmem>>, vector<1x8x32xf32>
    %118 = vector.shape_cast %117 : vector<1x8x32xf32> to vector<8x32xf32>
    %119 = vector.shape_cast %116 : vector<8x32xf32> to vector<1x8x32xf32>
    tpu.vector_store %arg9[%c2_69, %c0_70, %c0_71], %119 {strides = array<i32>} : memref<4x8x32xf32, #tpu.memory_space<vmem>>, vector<1x8x32xf32>,
    %c2_72 = arith.constant 2 : index
    %c0_73 = arith.constant 0 : index
    %c0_74 = arith.constant 0 : index
    %120 = vector.load %arg7[%c2_72, %c0_73, %c0_74] : memref<4x8x1xf32, #tpu.memory_space<vmem>>, vector<1x8x1xf32>
    %121 = vector.shape_cast %120 : vector<1x8x1xf32> to vector<8x1xf32>
    %122 = vector.shape_cast %95 : vector<8x1xf32> to vector<1x8x1xf32>
    tpu.vector_store %arg7[%c2_72, %c0_73, %c0_74], %122 {strides = array<i32>} : memref<4x8x1xf32, #tpu.memory_space<vmem>>, vector<1x8x1xf32>,
    %123 = vector.extract_strided_slice %4 {offsets = [0, 96], sizes = [8, 32], strides = [1, 1]} : vector<8x128xbf16> to vector<8x32xbf16>
    %124 = vector.extract_strided_slice %6 {offsets = [0, 96], sizes = [8, 32], strides = [1, 1]} : vector<8x128xbf16> to vector<8x32xbf16>
    %125 = vector.extract_strided_slice %8 {offsets = [0, 96], sizes = [8, 32], strides = [1, 1]} : vector<8x128xbf16> to vector<8x32xbf16>
    %cst_75 = arith.constant dense<0.000000e+00> : vector<8x8xf32>
    %126 = tpu.matmul %123, %124, %cst_75 {dimension_numbers = #tpu.dot_dimension_numbers<[1], [1], [0], [0], [0, 0, 1, 0], [], []>} : vector<8x32xbf16>, vector<8x32xbf16>, vector<8x8xf32> -> vector<8x8xf32>
    %cst_76 = arith.constant 0.176776692 : f32
    %127 = vector.broadcast %cst_76 : f32 to vector<8x8xf32>
    %128 = arith.mulf %126, %127 : vector<8x8xf32>
    %c3 = arith.constant 3 : index
    %c0_77 = arith.constant 0 : index
    %c0_78 = arith.constant 0 : index
    %129 = vector.load %arg7[%c3, %c0_77, %c0_78] : memref<4x8x1xf32, #tpu.memory_space<vmem>>, vector<1x8x1xf32>
    %130 = vector.shape_cast %129 : vector<1x8x1xf32> to vector<8x1xf32>
    %cst_79 = arith.constant dense<0xFF800000> : vector<8xf32>
    %131 = vector.multi_reduction <maximumf>, %128, %cst_79 [1] : vector<8x8xf32> to vector<8xf32>
    %132 = vector.shape_cast %131 : vector<8xf32> to vector<8x1xf32>
    %133 = arith.maximumf %130, %132 : vector<8x1xf32>
    %134 = arith.subf %130, %133 : vector<8x1xf32>
    %135 = math.exp %134 : vector<8x1xf32>
    %136 = vector.broadcast %133 : vector<8x1xf32> to vector<8x8xf32>
    %137 = arith.subf %128, %136 : vector<8x8xf32>
    %138 = math.exp %137 : vector<8x8xf32>
    %c3_80 = arith.constant 3 : index
    %c0_81 = arith.constant 0 : index
    %c0_82 = arith.constant 0 : index
    %139 = vector.load %arg8[%c3_80, %c0_81, %c0_82] : memref<4x8x1xf32, #tpu.memory_space<vmem>>, vector<1x8x1xf32>
    %140 = vector.shape_cast %139 : vector<1x8x1xf32> to vector<8x1xf32>
    %141 = arith.mulf %135, %140 : vector<8x1xf32>
    %cst_83 = arith.constant dense<0.000000e+00> : vector<8xf32>
    %142 = vector.multi_reduction <add>, %138, %cst_83 [1] : vector<8x8xf32> to vector<8xf32>
    %143 = vector.shape_cast %142 : vector<8xf32> to vector<8x1xf32>
    %144 = arith.addf %141, %143 : vector<8x1xf32>
    %c3_84 = arith.constant 3 : index
    %c0_85 = arith.constant 0 : index
    %c0_86 = arith.constant 0 : index
    %145 = vector.load %arg8[%c3_84, %c0_85, %c0_86] : memref<4x8x1xf32, #tpu.memory_space<vmem>>, vector<1x8x1xf32>
    %146 = vector.shape_cast %145 : vector<1x8x1xf32> to vector<8x1xf32>
    %147 = vector.shape_cast %144 : vector<8x1xf32> to vector<1x8x1xf32>
    tpu.vector_store %arg8[%c3_84, %c0_85, %c0_86], %147 {strides = array<i32>} : memref<4x8x1xf32, #tpu.memory_space<vmem>>, vector<1x8x1xf32>,
    %148 = arith.truncf %138 : vector<8x8xf32> to vector<8x8xbf16>
    %cst_87 = arith.constant dense<0.000000e+00> : vector<8x32xf32>
    %149 = tpu.matmul %148, %125, %cst_87 {dimension_numbers = #tpu.dot_dimension_numbers<[1], [0], [0], [1], [0, 0, 1, 1], [], []>} : vector<8x8xbf16>, vector<8x32xbf16>, vector<8x32xf32> -> vector<8x32xf32>
    %c3_88 = arith.constant 3 : index
    %c0_89 = arith.constant 0 : index
    %c0_90 = arith.constant 0 : index
    %150 = vector.load %arg9[%c3_88, %c0_89, %c0_90] : memref<4x8x32xf32, #tpu.memory_space<vmem>>, vector<1x8x32xf32>
    %151 = vector.shape_cast %150 : vector<1x8x32xf32> to vector<8x32xf32>
    %152 = vector.broadcast %135 : vector<8x1xf32> to vector<8x32xf32>
    %153 = arith.mulf %152, %151 : vector<8x32xf32>
    %154 = arith.addf %153, %149 : vector<8x32xf32>
    %c3_91 = arith.constant 3 : index
    %c0_92 = arith.constant 0 : index
    %c0_93 = arith.constant 0 : index
    %155 = vector.load %arg9[%c3_91, %c0_92, %c0_93] : memref<4x8x32xf32, #tpu.memory_space<vmem>>, vector<1x8x32xf32>
    %156 = vector.shape_cast %155 : vector<1x8x32xf32> to vector<8x32xf32>
    %157 = vector.shape_cast %154 : vector<8x32xf32> to vector<1x8x32xf32>
    tpu.vector_store %arg9[%c3_91, %c0_92, %c0_93], %157 {strides = array<i32>} : memref<4x8x32xf32, #tpu.memory_space<vmem>>, vector<1x8x32xf32>,
    %c3_94 = arith.constant 3 : index
    %c0_95 = arith.constant 0 : index
    %c0_96 = arith.constant 0 : index
    %158 = vector.load %arg7[%c3_94, %c0_95, %c0_96] : memref<4x8x1xf32, #tpu.memory_space<vmem>>, vector<1x8x1xf32>
    %159 = vector.shape_cast %158 : vector<1x8x1xf32> to vector<8x1xf32>
    %160 = vector.shape_cast %133 : vector<8x1xf32> to vector<1x8x1xf32>
    tpu.vector_store %arg7[%c3_94, %c0_95, %c0_96], %160 {strides = array<i32>} : memref<4x8x1xf32, #tpu.memory_space<vmem>>, vector<1x8x1xf32>,
    %c0_i32_97 = arith.constant 0 : i32
    %161 = arith.cmpi eq, %arg2, %c0_i32_97 : i32
    %162 = arith.extui %161 : i1 to i32
    %c0_i32_98 = arith.constant 0 : i32
    %163 = arith.cmpi ne, %162, %c0_i32_98 : i32
    scf.if %163 {
      %c0_99 = arith.constant 0 : index
      %c0_100 = arith.constant 0 : index
      %c0_101 = arith.constant 0 : index
      %164 = vector.load %arg8[%c0_99, %c0_100, %c0_101] : memref<4x8x1xf32, #tpu.memory_space<vmem>>, vector<1x8x1xf32>
      %165 = vector.shape_cast %164 : vector<1x8x1xf32> to vector<8x1xf32>
      %166 = tpu.reciprocal %165 {approx = true} : vector<8x1xf32> -> vector<8x1xf32>
      %c0_102 = arith.constant 0 : index
      %c0_103 = arith.constant 0 : index
      %c0_104 = arith.constant 0 : index
      %167 = vector.load %arg9[%c0_102, %c0_103, %c0_104] : memref<4x8x32xf32, #tpu.memory_space<vmem>>, vector<1x8x32xf32>
      %168 = vector.shape_cast %167 : vector<1x8x32xf32> to vector<8x32xf32>
      %169 = vector.broadcast %166 : vector<8x1xf32> to vector<8x32xf32>
      %170 = arith.mulf %168, %169 : vector<8x32xf32>
      %171 = arith.truncf %170 : vector<8x32xf32> to vector<8x32xbf16>
      %c0_105 = arith.constant 0 : index
      %c0_106 = arith.constant 0 : index
      %c0_107 = arith.constant 0 : index
      %172 = vector.load %arg6[%c0_105, %c0_106, %c0_107] : memref<1x8x128xbf16, #tpu.memory_space<vmem>>, vector<1x8x32xbf16>
      %173 = vector.shape_cast %172 : vector<1x8x32xbf16> to vector<8x32xbf16>
      %174 = vector.shape_cast %171 : vector<8x32xbf16> to vector<1x8x32xbf16>
      tpu.vector_store %arg6[%c0_105, %c0_106, %c0_107], %174 {strides = array<i32>} : memref<1x8x128xbf16, #tpu.memory_space<vmem>>, vector<1x8x32xbf16>,
      %c1_108 = arith.constant 1 : index
      %c0_109 = arith.constant 0 : index
      %c0_110 = arith.constant 0 : index
      %175 = vector.load %arg8[%c1_108, %c0_109, %c0_110] : memref<4x8x1xf32, #tpu.memory_space<vmem>>, vector<1x8x1xf32>
      %176 = vector.shape_cast %175 : vector<1x8x1xf32> to vector<8x1xf32>
      %177 = tpu.reciprocal %176 {approx = true} : vector<8x1xf32> -> vector<8x1xf32>
      %c1_111 = arith.constant 1 : index
      %c0_112 = arith.constant 0 : index
      %c0_113 = arith.constant 0 : index
      %178 = vector.load %arg9[%c1_111, %c0_112, %c0_113] : memref<4x8x32xf32, #tpu.memory_space<vmem>>, vector<1x8x32xf32>
      %179 = vector.shape_cast %178 : vector<1x8x32xf32> to vector<8x32xf32>
      %180 = vector.broadcast %177 : vector<8x1xf32> to vector<8x32xf32>
      %181 = arith.mulf %179, %180 : vector<8x32xf32>
      %182 = arith.truncf %181 : vector<8x32xf32> to vector<8x32xbf16>
      %c0_114 = arith.constant 0 : index
      %c0_115 = arith.constant 0 : index
      %c32 = arith.constant 32 : index
      %183 = vector.load %arg6[%c0_114, %c0_115, %c32] : memref<1x8x128xbf16, #tpu.memory_space<vmem>>, vector<1x8x32xbf16>
      %184 = vector.shape_cast %183 : vector<1x8x32xbf16> to vector<8x32xbf16>
      %185 = vector.shape_cast %182 : vector<8x32xbf16> to vector<1x8x32xbf16>
      tpu.vector_store %arg6[%c0_114, %c0_115, %c32], %185 {strides = array<i32>} : memref<1x8x128xbf16, #tpu.memory_space<vmem>>, vector<1x8x32xbf16>,
      %c2_116 = arith.constant 2 : index
      %c0_117 = arith.constant 0 : index
      %c0_118 = arith.constant 0 : index
      %186 = vector.load %arg8[%c2_116, %c0_117, %c0_118] : memref<4x8x1xf32, #tpu.memory_space<vmem>>, vector<1x8x1xf32>
      %187 = vector.shape_cast %186 : vector<1x8x1xf32> to vector<8x1xf32>
      %188 = tpu.reciprocal %187 {approx = true} : vector<8x1xf32> -> vector<8x1xf32>
      %c2_119 = arith.constant 2 : index
      %c0_120 = arith.constant 0 : index
      %c0_121 = arith.constant 0 : index
      %189 = vector.load %arg9[%c2_119, %c0_120, %c0_121] : memref<4x8x32xf32, #tpu.memory_space<vmem>>, vector<1x8x32xf32>
      %190 = vector.shape_cast %189 : vector<1x8x32xf32> to vector<8x32xf32>
      %191 = vector.broadcast %188 : vector<8x1xf32> to vector<8x32xf32>
      %192 = arith.mulf %190, %191 : vector<8x32xf32>
      %193 = arith.truncf %192 : vector<8x32xf32> to vector<8x32xbf16>
      %c0_122 = arith.constant 0 : index
      %c0_123 = arith.constant 0 : index
      %c64 = arith.constant 64 : index
      %194 = vector.load %arg6[%c0_122, %c0_123, %c64] : memref<1x8x128xbf16, #tpu.memory_space<vmem>>, vector<1x8x32xbf16>
      %195 = vector.shape_cast %194 : vector<1x8x32xbf16> to vector<8x32xbf16>
      %196 = vector.shape_cast %193 : vector<8x32xbf16> to vector<1x8x32xbf16>
      tpu.vector_store %arg6[%c0_122, %c0_123, %c64], %196 {strides = array<i32>} : memref<1x8x128xbf16, #tpu.memory_space<vmem>>, vector<1x8x32xbf16>,
      %c3_124 = arith.constant 3 : index
      %c0_125 = arith.constant 0 : index
      %c0_126 = arith.constant 0 : index
      %197 = vector.load %arg8[%c3_124, %c0_125, %c0_126] : memref<4x8x1xf32, #tpu.memory_space<vmem>>, vector<1x8x1xf32>
      %198 = vector.shape_cast %197 : vector<1x8x1xf32> to vector<8x1xf32>
      %199 = tpu.reciprocal %198 {approx = true} : vector<8x1xf32> -> vector<8x1xf32>
      %c3_127 = arith.constant 3 : index
      %c0_128 = arith.constant 0 : index
      %c0_129 = arith.constant 0 : index
      %200 = vector.load %arg9[%c3_127, %c0_128, %c0_129] : memref<4x8x32xf32, #tpu.memory_space<vmem>>, vector<1x8x32xf32>
      %201 = vector.shape_cast %200 : vector<1x8x32xf32> to vector<8x32xf32>
      %202 = vector.broadcast %199 : vector<8x1xf32> to vector<8x32xf32>
      %203 = arith.mulf %201, %202 : vector<8x32xf32>
      %204 = arith.truncf %203 : vector<8x32xf32> to vector<8x32xbf16>
      %c0_130 = arith.constant 0 : index
      %c0_131 = arith.constant 0 : index
      %c96 = arith.constant 96 : index
      %205 = vector.load %arg6[%c0_130, %c0_131, %c96] : memref<1x8x128xbf16, #tpu.memory_space<vmem>>, vector<1x8x32xbf16>
      %206 = vector.shape_cast %205 : vector<1x8x32xbf16> to vector<8x32xbf16>
      %207 = vector.shape_cast %204 : vector<8x32xbf16> to vector<1x8x32xbf16>
      tpu.vector_store %arg6[%c0_130, %c0_131, %c96], %207 {strides = array<i32>} : memref<1x8x128xbf16, #tpu.memory_space<vmem>>, vector<1x8x32xbf16>,
    } else {
    }
    return
  }
  func.func @transform_0(%arg0: i32, %arg1: i32, %arg2: i32) -> (i32, i32, i32) {
    %c0_i32 = arith.constant 0 : i32
    %c0_i32_0 = arith.constant 0 : i32
    return %arg0, %arg1, %c0_i32 : i32, i32, i32
  }
  func.func @transform_1(%arg0: i32, %arg1: i32, %arg2: i32) -> (i32, i32, i32) {
    %c1_i32 = arith.constant 1 : i32
    %c0_i32 = arith.constant 0 : i32
    return %arg0, %arg2, %c1_i32 : i32, i32, i32
  }
  func.func @transform_2(%arg0: i32, %arg1: i32, %arg2: i32) -> (i32, i32, i32) {
    %c2_i32 = arith.constant 2 : i32
    %c0_i32 = arith.constant 0 : i32
    return %arg0, %arg2, %c2_i32 : i32, i32, i32
  }
  func.func @transform_3(%arg0: i32, %arg1: i32, %arg2: i32) -> (i32, i32, i32) {
    %c0_i32 = arith.constant 0 : i32
    %c0_i32_0 = arith.constant 0 : i32
    return %arg0, %arg1, %c0_i32 : i32, i32, i32
  }
}

module attributes {stable_mosaic.version = 11 : i64} {
  func.func @_matmul_add_ln_kernel(%arg0: i32, %arg1: i32, %arg2: memref<16x128xbf16, #tpu.memory_space<vmem>>, %arg3: memref<128x32xbf16, #tpu.memory_space<vmem>>, %arg4: memref<16x32xf32, #tpu.memory_space<vmem>>, %arg5: memref<1x32xf32, #tpu.memory_space<vmem>>, %arg6: memref<1x32xf32, #tpu.memory_space<vmem>>, %arg7: memref<16x32xf32, #tpu.memory_space<vmem>>, %arg8: memref<16x32xf32, #tpu.memory_space<vmem>>) attributes {dimension_semantics = [#tpu.dimension_semantics<parallel>, #tpu.dimension_semantics<arbitrary>], iteration_bounds = array<i64: 1, 1>, scalar_prefetch = 0 : i64, scratch_operands = 1 : i64, tpu.core_type = #tpu.core_type<tc>, window_params = [{transform_indices = @transform_0, window_bounds = array<i64: 16, 128>}, {transform_indices = @transform_1, window_bounds = array<i64: 128, 32>}, {transform_indices = @transform_2, window_bounds = array<i64: 16, 32>}, {pipeline_mode = #tpu.pipeline_mode<synchronous>, transform_indices = @transform_3, window_bounds = array<i64: 1, 32>}, {pipeline_mode = #tpu.pipeline_mode<synchronous>, transform_indices = @transform_4, window_bounds = array<i64: 1, 32>}, {transform_indices = @transform_5, window_bounds = array<i64: 16, 32>}]} {
    %c0_i32 = arith.constant 0 : i32
    %0 = arith.cmpi eq, %arg1, %c0_i32 : i32
    %1 = arith.extui %0 : i1 to i32
    %c0_i32_0 = arith.constant 0 : i32
    %2 = arith.cmpi ne, %1, %c0_i32_0 : i32
    scf.if %2 {
      %cst_10 = arith.constant 0.000000e+00 : f32
      %12 = vector.broadcast %cst_10 : f32 to vector<16x32xf32>
      %c0_11 = arith.constant 0 : index
      %c0_12 = arith.constant 0 : index
      %13 = vector.load %arg8[%c0_11, %c0_12] : memref<16x32xf32, #tpu.memory_space<vmem>>, vector<16x32xf32>
      tpu.vector_store %arg8[%c0_11, %c0_12], %12 {strides = array<i32>} : memref<16x32xf32, #tpu.memory_space<vmem>>, vector<16x32xf32>,
    } else {
    }
    %c0 = arith.constant 0 : index
    %c0_1 = arith.constant 0 : index
    %3 = vector.load %arg8[%c0, %c0_1] : memref<16x32xf32, #tpu.memory_space<vmem>>, vector<16x32xf32>
    %c0_2 = arith.constant 0 : index
    %c0_3 = arith.constant 0 : index
    %4 = vector.load %arg2[%c0_2, %c0_3] : memref<16x128xbf16, #tpu.memory_space<vmem>>, vector<16x128xbf16>
    %c0_4 = arith.constant 0 : index
    %c0_5 = arith.constant 0 : index
    %5 = vector.load %arg3[%c0_4, %c0_5] : memref<128x32xbf16, #tpu.memory_space<vmem>>, vector<128x32xbf16>
    %cst = arith.constant dense<0.000000e+00> : vector<16x32xf32>
    %6 = tpu.matmul %4, %5, %cst {dimension_numbers = #tpu.dot_dimension_numbers<[1], [0], [0], [1], [0, 0, 1, 1], [], []>} : vector<16x128xbf16>, vector<128x32xbf16>, vector<16x32xf32> -> vector<16x32xf32>
    %7 = arith.addf %3, %6 : vector<16x32xf32>
    %c0_6 = arith.constant 0 : index
    %c0_7 = arith.constant 0 : index
    %8 = vector.load %arg8[%c0_6, %c0_7] : memref<16x32xf32, #tpu.memory_space<vmem>>, vector<16x32xf32>
    tpu.vector_store %arg8[%c0_6, %c0_7], %7 {strides = array<i32>} : memref<16x32xf32, #tpu.memory_space<vmem>>, vector<16x32xf32>,
    %c0_i32_8 = arith.constant 0 : i32
    %9 = arith.cmpi eq, %arg1, %c0_i32_8 : i32
    %10 = arith.extui %9 : i1 to i32
    %c0_i32_9 = arith.constant 0 : i32
    %11 = arith.cmpi ne, %10, %c0_i32_9 : i32
    scf.if %11 {
      %c0_10 = arith.constant 0 : index
      %c0_11 = arith.constant 0 : index
      %12 = vector.load %arg8[%c0_10, %c0_11] : memref<16x32xf32, #tpu.memory_space<vmem>>, vector<16x32xf32>
      %c0_12 = arith.constant 0 : index
      %c0_13 = arith.constant 0 : index
      %13 = vector.load %arg4[%c0_12, %c0_13] : memref<16x32xf32, #tpu.memory_space<vmem>>, vector<16x32xf32>
      %14 = arith.addf %12, %13 : vector<16x32xf32>
      %cst_14 = arith.constant dense<0.000000e+00> : vector<16xf32>
      %15 = vector.multi_reduction <add>, %14, %cst_14 [1] : vector<16x32xf32> to vector<16xf32>
      %16 = vector.shape_cast %15 : vector<16xf32> to vector<16x1xf32>
      %cst_15 = arith.constant 3.200000e+01 : f32
      %17 = vector.broadcast %cst_15 : f32 to vector<16x1xf32>
      %18 = arith.divf %16, %17 : vector<16x1xf32>
      %19 = vector.broadcast %18 : vector<16x1xf32> to vector<16x32xf32>
      %20 = arith.subf %14, %19 : vector<16x32xf32>
      %21 = arith.mulf %20, %20 : vector<16x32xf32>
      %cst_16 = arith.constant dense<0.000000e+00> : vector<16xf32>
      %22 = vector.multi_reduction <add>, %21, %cst_16 [1] : vector<16x32xf32> to vector<16xf32>
      %23 = vector.shape_cast %22 : vector<16xf32> to vector<16x1xf32>
      %cst_17 = arith.constant 3.200000e+01 : f32
      %24 = vector.broadcast %cst_17 : f32 to vector<16x1xf32>
      %25 = arith.divf %23, %24 : vector<16x1xf32>
      %26 = vector.broadcast %18 : vector<16x1xf32> to vector<16x32xf32>
      %27 = arith.subf %14, %26 : vector<16x32xf32>
      %cst_18 = arith.constant 9.99999997E-7 : f32
      %28 = vector.broadcast %cst_18 : f32 to vector<16x1xf32>
      %29 = arith.addf %25, %28 : vector<16x1xf32>
      %30 = math.rsqrt %29 : vector<16x1xf32>
      %31 = vector.broadcast %30 : vector<16x1xf32> to vector<16x32xf32>
      %32 = arith.mulf %27, %31 : vector<16x32xf32>
      %c0_19 = arith.constant 0 : index
      %c0_20 = arith.constant 0 : index
      %33 = vector.load %arg5[%c0_19, %c0_20] : memref<1x32xf32, #tpu.memory_space<vmem>>, vector<1x32xf32>
      %34 = vector.broadcast %33 : vector<1x32xf32> to vector<16x32xf32>
      %35 = arith.mulf %32, %34 : vector<16x32xf32>
      %c0_21 = arith.constant 0 : index
      %c0_22 = arith.constant 0 : index
      %36 = vector.load %arg6[%c0_21, %c0_22] : memref<1x32xf32, #tpu.memory_space<vmem>>, vector<1x32xf32>
      %37 = vector.broadcast %36 : vector<1x32xf32> to vector<16x32xf32>
      %38 = arith.addf %35, %37 : vector<16x32xf32>
      %c0_23 = arith.constant 0 : index
      %c0_24 = arith.constant 0 : index
      %39 = vector.load %arg7[%c0_23, %c0_24] : memref<16x32xf32, #tpu.memory_space<vmem>>, vector<16x32xf32>
      tpu.vector_store %arg7[%c0_23, %c0_24], %38 {strides = array<i32>} : memref<16x32xf32, #tpu.memory_space<vmem>>, vector<16x32xf32>,
    } else {
    }
    return
  }
  func.func @transform_0(%arg0: i32, %arg1: i32) -> (i32, i32) {
    %c0_i32 = arith.constant 0 : i32
    return %arg0, %arg1 : i32, i32
  }
  func.func @transform_1(%arg0: i32, %arg1: i32) -> (i32, i32) {
    %c0_i32 = arith.constant 0 : i32
    %c0_i32_0 = arith.constant 0 : i32
    return %arg1, %c0_i32 : i32, i32
  }
  func.func @transform_2(%arg0: i32, %arg1: i32) -> (i32, i32) {
    %c0_i32 = arith.constant 0 : i32
    %c0_i32_0 = arith.constant 0 : i32
    return %arg0, %c0_i32 : i32, i32
  }
  func.func @transform_3(%arg0: i32, %arg1: i32) -> (i32, i32) {
    %c0_i32 = arith.constant 0 : i32
    %c0_i32_0 = arith.constant 0 : i32
    %c0_i32_1 = arith.constant 0 : i32
    return %c0_i32, %c0_i32_0 : i32, i32
  }
  func.func @transform_4(%arg0: i32, %arg1: i32) -> (i32, i32) {
    %c0_i32 = arith.constant 0 : i32
    %c0_i32_0 = arith.constant 0 : i32
    %c0_i32_1 = arith.constant 0 : i32
    return %c0_i32, %c0_i32_0 : i32, i32
  }
  func.func @transform_5(%arg0: i32, %arg1: i32) -> (i32, i32) {
    %c0_i32 = arith.constant 0 : i32
    %c0_i32_0 = arith.constant 0 : i32
    return %arg0, %c0_i32 : i32, i32
  }
}

module attributes {stable_mosaic.version = 11 : i64} {
  func.func @_matmul_add_ln_kernel(%arg0: i32, %arg1: i32, %arg2: memref<16x32xbf16, #tpu.memory_space<vmem>>, %arg3: memref<32x32xbf16, #tpu.memory_space<vmem>>, %arg4: memref<1x32xf32, #tpu.memory_space<vmem>>, %arg5: memref<16x32xf32, #tpu.memory_space<vmem>>, %arg6: memref<1x32xf32, #tpu.memory_space<vmem>>, %arg7: memref<1x32xf32, #tpu.memory_space<vmem>>, %arg8: memref<16x32xf32, #tpu.memory_space<vmem>>, %arg9: memref<16x32xf32, #tpu.memory_space<vmem>>) attributes {dimension_semantics = [#tpu.dimension_semantics<parallel>, #tpu.dimension_semantics<arbitrary>], iteration_bounds = array<i64: 1, 1>, scalar_prefetch = 0 : i64, scratch_operands = 1 : i64, tpu.core_type = #tpu.core_type<tc>, window_params = [{transform_indices = @transform_0, window_bounds = array<i64: 16, 32>}, {transform_indices = @transform_1, window_bounds = array<i64: 32, 32>}, {pipeline_mode = #tpu.pipeline_mode<synchronous>, transform_indices = @transform_2, window_bounds = array<i64: 1, 32>}, {transform_indices = @transform_3, window_bounds = array<i64: 16, 32>}, {pipeline_mode = #tpu.pipeline_mode<synchronous>, transform_indices = @transform_4, window_bounds = array<i64: 1, 32>}, {pipeline_mode = #tpu.pipeline_mode<synchronous>, transform_indices = @transform_5, window_bounds = array<i64: 1, 32>}, {transform_indices = @transform_6, window_bounds = array<i64: 16, 32>}]} {
    %c0_i32 = arith.constant 0 : i32
    %0 = arith.cmpi eq, %arg1, %c0_i32 : i32
    %1 = arith.extui %0 : i1 to i32
    %c0_i32_0 = arith.constant 0 : i32
    %2 = arith.cmpi ne, %1, %c0_i32_0 : i32
    scf.if %2 {
      %cst_10 = arith.constant 0.000000e+00 : f32
      %12 = vector.broadcast %cst_10 : f32 to vector<16x32xf32>
      %c0_11 = arith.constant 0 : index
      %c0_12 = arith.constant 0 : index
      %13 = vector.load %arg9[%c0_11, %c0_12] : memref<16x32xf32, #tpu.memory_space<vmem>>, vector<16x32xf32>
      tpu.vector_store %arg9[%c0_11, %c0_12], %12 {strides = array<i32>} : memref<16x32xf32, #tpu.memory_space<vmem>>, vector<16x32xf32>,
    } else {
    }
    %c0 = arith.constant 0 : index
    %c0_1 = arith.constant 0 : index
    %3 = vector.load %arg9[%c0, %c0_1] : memref<16x32xf32, #tpu.memory_space<vmem>>, vector<16x32xf32>
    %c0_2 = arith.constant 0 : index
    %c0_3 = arith.constant 0 : index
    %4 = vector.load %arg2[%c0_2, %c0_3] : memref<16x32xbf16, #tpu.memory_space<vmem>>, vector<16x32xbf16>
    %c0_4 = arith.constant 0 : index
    %c0_5 = arith.constant 0 : index
    %5 = vector.load %arg3[%c0_4, %c0_5] : memref<32x32xbf16, #tpu.memory_space<vmem>>, vector<32x32xbf16>
    %cst = arith.constant dense<0.000000e+00> : vector<16x32xf32>
    %6 = tpu.matmul %4, %5, %cst {dimension_numbers = #tpu.dot_dimension_numbers<[1], [0], [0], [1], [0, 0, 1, 1], [], []>} : vector<16x32xbf16>, vector<32x32xbf16>, vector<16x32xf32> -> vector<16x32xf32>
    %7 = arith.addf %3, %6 : vector<16x32xf32>
    %c0_6 = arith.constant 0 : index
    %c0_7 = arith.constant 0 : index
    %8 = vector.load %arg9[%c0_6, %c0_7] : memref<16x32xf32, #tpu.memory_space<vmem>>, vector<16x32xf32>
    tpu.vector_store %arg9[%c0_6, %c0_7], %7 {strides = array<i32>} : memref<16x32xf32, #tpu.memory_space<vmem>>, vector<16x32xf32>,
    %c0_i32_8 = arith.constant 0 : i32
    %9 = arith.cmpi eq, %arg1, %c0_i32_8 : i32
    %10 = arith.extui %9 : i1 to i32
    %c0_i32_9 = arith.constant 0 : i32
    %11 = arith.cmpi ne, %10, %c0_i32_9 : i32
    scf.if %11 {
      %c0_10 = arith.constant 0 : index
      %c0_11 = arith.constant 0 : index
      %12 = vector.load %arg9[%c0_10, %c0_11] : memref<16x32xf32, #tpu.memory_space<vmem>>, vector<16x32xf32>
      %c0_12 = arith.constant 0 : index
      %c0_13 = arith.constant 0 : index
      %13 = vector.load %arg4[%c0_12, %c0_13] : memref<1x32xf32, #tpu.memory_space<vmem>>, vector<1x32xf32>
      %14 = vector.broadcast %13 : vector<1x32xf32> to vector<16x32xf32>
      %15 = arith.addf %12, %14 : vector<16x32xf32>
      %c0_14 = arith.constant 0 : index
      %c0_15 = arith.constant 0 : index
      %16 = vector.load %arg5[%c0_14, %c0_15] : memref<16x32xf32, #tpu.memory_space<vmem>>, vector<16x32xf32>
      %17 = arith.addf %15, %16 : vector<16x32xf32>
      %cst_16 = arith.constant dense<0.000000e+00> : vector<16xf32>
      %18 = vector.multi_reduction <add>, %17, %cst_16 [1] : vector<16x32xf32> to vector<16xf32>
      %19 = vector.shape_cast %18 : vector<16xf32> to vector<16x1xf32>
      %cst_17 = arith.constant 3.200000e+01 : f32
      %20 = vector.broadcast %cst_17 : f32 to vector<16x1xf32>
      %21 = arith.divf %19, %20 : vector<16x1xf32>
      %22 = vector.broadcast %21 : vector<16x1xf32> to vector<16x32xf32>
      %23 = arith.subf %17, %22 : vector<16x32xf32>
      %24 = arith.mulf %23, %23 : vector<16x32xf32>
      %cst_18 = arith.constant dense<0.000000e+00> : vector<16xf32>
      %25 = vector.multi_reduction <add>, %24, %cst_18 [1] : vector<16x32xf32> to vector<16xf32>
      %26 = vector.shape_cast %25 : vector<16xf32> to vector<16x1xf32>
      %cst_19 = arith.constant 3.200000e+01 : f32
      %27 = vector.broadcast %cst_19 : f32 to vector<16x1xf32>
      %28 = arith.divf %26, %27 : vector<16x1xf32>
      %29 = vector.broadcast %21 : vector<16x1xf32> to vector<16x32xf32>
      %30 = arith.subf %17, %29 : vector<16x32xf32>
      %cst_20 = arith.constant 9.99999997E-7 : f32
      %31 = vector.broadcast %cst_20 : f32 to vector<16x1xf32>
      %32 = arith.addf %28, %31 : vector<16x1xf32>
      %33 = math.rsqrt %32 : vector<16x1xf32>
      %34 = vector.broadcast %33 : vector<16x1xf32> to vector<16x32xf32>
      %35 = arith.mulf %30, %34 : vector<16x32xf32>
      %c0_21 = arith.constant 0 : index
      %c0_22 = arith.constant 0 : index
      %36 = vector.load %arg6[%c0_21, %c0_22] : memref<1x32xf32, #tpu.memory_space<vmem>>, vector<1x32xf32>
      %37 = vector.broadcast %36 : vector<1x32xf32> to vector<16x32xf32>
      %38 = arith.mulf %35, %37 : vector<16x32xf32>
      %c0_23 = arith.constant 0 : index
      %c0_24 = arith.constant 0 : index
      %39 = vector.load %arg7[%c0_23, %c0_24] : memref<1x32xf32, #tpu.memory_space<vmem>>, vector<1x32xf32>
      %40 = vector.broadcast %39 : vector<1x32xf32> to vector<16x32xf32>
      %41 = arith.addf %38, %40 : vector<16x32xf32>
      %c0_25 = arith.constant 0 : index
      %c0_26 = arith.constant 0 : index
      %42 = vector.load %arg8[%c0_25, %c0_26] : memref<16x32xf32, #tpu.memory_space<vmem>>, vector<16x32xf32>
      tpu.vector_store %arg8[%c0_25, %c0_26], %41 {strides = array<i32>} : memref<16x32xf32, #tpu.memory_space<vmem>>, vector<16x32xf32>,
    } else {
    }
    return
  }
  func.func @transform_0(%arg0: i32, %arg1: i32) -> (i32, i32) {
    %c0_i32 = arith.constant 0 : i32
    return %arg0, %arg1 : i32, i32
  }
  func.func @transform_1(%arg0: i32, %arg1: i32) -> (i32, i32) {
    %c0_i32 = arith.constant 0 : i32
    %c0_i32_0 = arith.constant 0 : i32
    return %arg1, %c0_i32 : i32, i32
  }
  func.func @transform_2(%arg0: i32, %arg1: i32) -> (i32, i32) {
    %c0_i32 = arith.constant 0 : i32
    %c0_i32_0 = arith.constant 0 : i32
    %c0_i32_1 = arith.constant 0 : i32
    return %c0_i32, %c0_i32_0 : i32, i32
  }
  func.func @transform_3(%arg0: i32, %arg1: i32) -> (i32, i32) {
    %c0_i32 = arith.constant 0 : i32
    %c0_i32_0 = arith.constant 0 : i32
    return %arg0, %c0_i32 : i32, i32
  }
  func.func @transform_4(%arg0: i32, %arg1: i32) -> (i32, i32) {
    %c0_i32 = arith.constant 0 : i32
    %c0_i32_0 = arith.constant 0 : i32
    %c0_i32_1 = arith.constant 0 : i32
    return %c0_i32, %c0_i32_0 : i32, i32
  }
  func.func @transform_5(%arg0: i32, %arg1: i32) -> (i32, i32) {
    %c0_i32 = arith.constant 0 : i32
    %c0_i32_0 = arith.constant 0 : i32
    %c0_i32_1 = arith.constant 0 : i32
    return %c0_i32, %c0_i32_0 : i32, i32
  }
  func.func @transform_6(%arg0: i32, %arg1: i32) -> (i32, i32) {
    %c0_i32 = arith.constant 0 : i32
    %c0_i32_0 = arith.constant 0 : i32
    return %arg0, %c0_i32 : i32, i32
  }
}

module attributes {stable_mosaic.version = 11 : i64} {
  func.func @_matmul_add_ln_kernel(%arg0: i32, %arg1: i32, %arg2: memref<16x32xbf16, #tpu.memory_space<vmem>>, %arg3: memref<32x32xbf16, #tpu.memory_space<vmem>>, %arg4: memref<1x32xf32, #tpu.memory_space<vmem>>, %arg5: memref<16x32xf32, #tpu.memory_space<vmem>>, %arg6: memref<1x32xf32, #tpu.memory_space<vmem>>, %arg7: memref<1x32xf32, #tpu.memory_space<vmem>>, %arg8: memref<16x32xf32, #tpu.memory_space<vmem>>, %arg9: memref<16x32xf32, #tpu.memory_space<vmem>>) attributes {dimension_semantics = [#tpu.dimension_semantics<parallel>, #tpu.dimension_semantics<arbitrary>], iteration_bounds = array<i64: 1, 1>, scalar_prefetch = 0 : i64, scratch_operands = 1 : i64, tpu.core_type = #tpu.core_type<tc>, window_params = [{transform_indices = @transform_0, window_bounds = array<i64: 16, 32>}, {transform_indices = @transform_1, window_bounds = array<i64: 32, 32>}, {pipeline_mode = #tpu.pipeline_mode<synchronous>, transform_indices = @transform_2, window_bounds = array<i64: 1, 32>}, {transform_indices = @transform_3, window_bounds = array<i64: 16, 32>}, {pipeline_mode = #tpu.pipeline_mode<synchronous>, transform_indices = @transform_4, window_bounds = array<i64: 1, 32>}, {pipeline_mode = #tpu.pipeline_mode<synchronous>, transform_indices = @transform_5, window_bounds = array<i64: 1, 32>}, {transform_indices = @transform_6, window_bounds = array<i64: 16, 32>}]} {
    %c0_i32 = arith.constant 0 : i32
    %0 = arith.cmpi eq, %arg1, %c0_i32 : i32
    %1 = arith.extui %0 : i1 to i32
    %c0_i32_0 = arith.constant 0 : i32
    %2 = arith.cmpi ne, %1, %c0_i32_0 : i32
    scf.if %2 {
      %cst_10 = arith.constant 0.000000e+00 : f32
      %12 = vector.broadcast %cst_10 : f32 to vector<16x32xf32>
      %c0_11 = arith.constant 0 : index
      %c0_12 = arith.constant 0 : index
      %13 = vector.load %arg9[%c0_11, %c0_12] : memref<16x32xf32, #tpu.memory_space<vmem>>, vector<16x32xf32>
      tpu.vector_store %arg9[%c0_11, %c0_12], %12 {strides = array<i32>} : memref<16x32xf32, #tpu.memory_space<vmem>>, vector<16x32xf32>,
    } else {
    }
    %c0 = arith.constant 0 : index
    %c0_1 = arith.constant 0 : index
    %3 = vector.load %arg9[%c0, %c0_1] : memref<16x32xf32, #tpu.memory_space<vmem>>, vector<16x32xf32>
    %c0_2 = arith.constant 0 : index
    %c0_3 = arith.constant 0 : index
    %4 = vector.load %arg2[%c0_2, %c0_3] : memref<16x32xbf16, #tpu.memory_space<vmem>>, vector<16x32xbf16>
    %c0_4 = arith.constant 0 : index
    %c0_5 = arith.constant 0 : index
    %5 = vector.load %arg3[%c0_4, %c0_5] : memref<32x32xbf16, #tpu.memory_space<vmem>>, vector<32x32xbf16>
    %cst = arith.constant dense<0.000000e+00> : vector<16x32xf32>
    %6 = tpu.matmul %4, %5, %cst {dimension_numbers = #tpu.dot_dimension_numbers<[1], [0], [0], [1], [0, 0, 1, 1], [], []>} : vector<16x32xbf16>, vector<32x32xbf16>, vector<16x32xf32> -> vector<16x32xf32>
    %7 = arith.addf %3, %6 : vector<16x32xf32>
    %c0_6 = arith.constant 0 : index
    %c0_7 = arith.constant 0 : index
    %8 = vector.load %arg9[%c0_6, %c0_7] : memref<16x32xf32, #tpu.memory_space<vmem>>, vector<16x32xf32>
    tpu.vector_store %arg9[%c0_6, %c0_7], %7 {strides = array<i32>} : memref<16x32xf32, #tpu.memory_space<vmem>>, vector<16x32xf32>,
    %c0_i32_8 = arith.constant 0 : i32
    %9 = arith.cmpi eq, %arg1, %c0_i32_8 : i32
    %10 = arith.extui %9 : i1 to i32
    %c0_i32_9 = arith.constant 0 : i32
    %11 = arith.cmpi ne, %10, %c0_i32_9 : i32
    scf.if %11 {
      %c0_10 = arith.constant 0 : index
      %c0_11 = arith.constant 0 : index
      %12 = vector.load %arg9[%c0_10, %c0_11] : memref<16x32xf32, #tpu.memory_space<vmem>>, vector<16x32xf32>
      %c0_12 = arith.constant 0 : index
      %c0_13 = arith.constant 0 : index
      %13 = vector.load %arg4[%c0_12, %c0_13] : memref<1x32xf32, #tpu.memory_space<vmem>>, vector<1x32xf32>
      %14 = vector.broadcast %13 : vector<1x32xf32> to vector<16x32xf32>
      %15 = arith.addf %12, %14 : vector<16x32xf32>
      %c0_14 = arith.constant 0 : index
      %c0_15 = arith.constant 0 : index
      %16 = vector.load %arg5[%c0_14, %c0_15] : memref<16x32xf32, #tpu.memory_space<vmem>>, vector<16x32xf32>
      %17 = arith.addf %15, %16 : vector<16x32xf32>
      %cst_16 = arith.constant dense<0.000000e+00> : vector<16xf32>
      %18 = vector.multi_reduction <add>, %17, %cst_16 [1] : vector<16x32xf32> to vector<16xf32>
      %19 = vector.shape_cast %18 : vector<16xf32> to vector<16x1xf32>
      %cst_17 = arith.constant 3.200000e+01 : f32
      %20 = vector.broadcast %cst_17 : f32 to vector<16x1xf32>
      %21 = arith.divf %19, %20 : vector<16x1xf32>
      %22 = vector.broadcast %21 : vector<16x1xf32> to vector<16x32xf32>
      %23 = arith.subf %17, %22 : vector<16x32xf32>
      %24 = arith.mulf %23, %23 : vector<16x32xf32>
      %cst_18 = arith.constant dense<0.000000e+00> : vector<16xf32>
      %25 = vector.multi_reduction <add>, %24, %cst_18 [1] : vector<16x32xf32> to vector<16xf32>
      %26 = vector.shape_cast %25 : vector<16xf32> to vector<16x1xf32>
      %cst_19 = arith.constant 3.200000e+01 : f32
      %27 = vector.broadcast %cst_19 : f32 to vector<16x1xf32>
      %28 = arith.divf %26, %27 : vector<16x1xf32>
      %29 = vector.broadcast %21 : vector<16x1xf32> to vector<16x32xf32>
      %30 = arith.subf %17, %29 : vector<16x32xf32>
      %cst_20 = arith.constant 9.99999997E-7 : f32
      %31 = vector.broadcast %cst_20 : f32 to vector<16x1xf32>
      %32 = arith.addf %28, %31 : vector<16x1xf32>
      %33 = math.rsqrt %32 : vector<16x1xf32>
      %34 = vector.broadcast %33 : vector<16x1xf32> to vector<16x32xf32>
      %35 = arith.mulf %30, %34 : vector<16x32xf32>
      %c0_21 = arith.constant 0 : index
      %c0_22 = arith.constant 0 : index
      %36 = vector.load %arg6[%c0_21, %c0_22] : memref<1x32xf32, #tpu.memory_space<vmem>>, vector<1x32xf32>
      %37 = vector.broadcast %36 : vector<1x32xf32> to vector<16x32xf32>
      %38 = arith.mulf %35, %37 : vector<16x32xf32>
      %c0_23 = arith.constant 0 : index
      %c0_24 = arith.constant 0 : index
      %39 = vector.load %arg7[%c0_23, %c0_24] : memref<1x32xf32, #tpu.memory_space<vmem>>, vector<1x32xf32>
      %40 = vector.broadcast %39 : vector<1x32xf32> to vector<16x32xf32>
      %41 = arith.addf %38, %40 : vector<16x32xf32>
      %c0_25 = arith.constant 0 : index
      %c0_26 = arith.constant 0 : index
      %42 = vector.load %arg8[%c0_25, %c0_26] : memref<16x32xf32, #tpu.memory_space<vmem>>, vector<16x32xf32>
      tpu.vector_store %arg8[%c0_25, %c0_26], %41 {strides = array<i32>} : memref<16x32xf32, #tpu.memory_space<vmem>>, vector<16x32xf32>,
    } else {
    }
    return
  }
  func.func @transform_0(%arg0: i32, %arg1: i32) -> (i32, i32) {
    %c0_i32 = arith.constant 0 : i32
    return %arg0, %arg1 : i32, i32
  }
  func.func @transform_1(%arg0: i32, %arg1: i32) -> (i32, i32) {
    %c0_i32 = arith.constant 0 : i32
    %c0_i32_0 = arith.constant 0 : i32
    return %arg1, %c0_i32 : i32, i32
  }
  func.func @transform_2(%arg0: i32, %arg1: i32) -> (i32, i32) {
    %c0_i32 = arith.constant 0 : i32
    %c0_i32_0 = arith.constant 0 : i32
    %c0_i32_1 = arith.constant 0 : i32
    return %c0_i32, %c0_i32_0 : i32, i32
  }
  func.func @transform_3(%arg0: i32, %arg1: i32) -> (i32, i32) {
    %c0_i32 = arith.constant 0 : i32
    %c0_i32_0 = arith.constant 0 : i32
    return %arg0, %c0_i32 : i32, i32
  }
  func.func @transform_4(%arg0: i32, %arg1: i32) -> (i32, i32) {
    %c0_i32 = arith.constant 0 : i32
    %c0_i32_0 = arith.constant 0 : i32
    %c0_i32_1 = arith.constant 0 : i32
    return %c0_i32, %c0_i32_0 : i32, i32
  }
  func.func @transform_5(%arg0: i32, %arg1: i32) -> (i32, i32) {
    %c0_i32 = arith.constant 0 : i32
    %c0_i32_0 = arith.constant 0 : i32
    %c0_i32_1 = arith.constant 0 : i32
    return %c0_i32, %c0_i32_0 : i32, i32
  }
  func.func @transform_6(%arg0: i32, %arg1: i32) -> (i32, i32) {
    %c0_i32 = arith.constant 0 : i32
    %c0_i32_0 = arith.constant 0 : i32
    return %arg0, %c0_i32 : i32, i32
  }
}

module attributes {stable_mosaic.version = 11 : i64} {
  func.func @_matmul_kernel(%arg0: i32, %arg1: i32, %arg2: i32, %arg3: memref<16x32xf32, #tpu.memory_space<vmem>>, %arg4: memref<32x32xbf16, #tpu.memory_space<vmem>>, %arg5: memref<1x32xf32, #tpu.memory_space<vmem>>, %arg6: memref<16x32xbf16, #tpu.memory_space<vmem>>, %arg7: memref<16x32xf32, #tpu.memory_space<vmem>>) attributes {dimension_semantics = [#tpu.dimension_semantics<parallel>, #tpu.dimension_semantics<parallel>, #tpu.dimension_semantics<arbitrary>], iteration_bounds = array<i64: 1, 1, 1>, scalar_prefetch = 0 : i64, scratch_operands = 1 : i64, tpu.core_type = #tpu.core_type<tc>, window_params = [{transform_indices = @transform_0, window_bounds = array<i64: 16, 32>}, {transform_indices = @transform_1, window_bounds = array<i64: 32, 32>}, {transform_indices = @transform_2, window_bounds = array<i64: 1, 32>}, {transform_indices = @transform_3, window_bounds = array<i64: 16, 32>}]} {
    %c0_i32 = arith.constant 0 : i32
    %0 = arith.cmpi eq, %arg2, %c0_i32 : i32
    %1 = arith.extui %0 : i1 to i32
    %c0_i32_0 = arith.constant 0 : i32
    %2 = arith.cmpi ne, %1, %c0_i32_0 : i32
    scf.if %2 {
      %cst_10 = arith.constant 0.000000e+00 : f32
      %13 = vector.broadcast %cst_10 : f32 to vector<16x32xf32>
      %c0_11 = arith.constant 0 : index
      %c0_12 = arith.constant 0 : index
      %14 = vector.load %arg7[%c0_11, %c0_12] : memref<16x32xf32, #tpu.memory_space<vmem>>, vector<16x32xf32>
      tpu.vector_store %arg7[%c0_11, %c0_12], %13 {strides = array<i32>} : memref<16x32xf32, #tpu.memory_space<vmem>>, vector<16x32xf32>,
    } else {
    }
    %c0 = arith.constant 0 : index
    %c0_1 = arith.constant 0 : index
    %3 = vector.load %arg7[%c0, %c0_1] : memref<16x32xf32, #tpu.memory_space<vmem>>, vector<16x32xf32>
    %c0_2 = arith.constant 0 : index
    %c0_3 = arith.constant 0 : index
    %4 = vector.load %arg3[%c0_2, %c0_3] : memref<16x32xf32, #tpu.memory_space<vmem>>, vector<16x32xf32>
    %5 = arith.truncf %4 : vector<16x32xf32> to vector<16x32xbf16>
    %c0_4 = arith.constant 0 : index
    %c0_5 = arith.constant 0 : index
    %6 = vector.load %arg4[%c0_4, %c0_5] : memref<32x32xbf16, #tpu.memory_space<vmem>>, vector<32x32xbf16>
    %cst = arith.constant dense<0.000000e+00> : vector<16x32xf32>
    %7 = tpu.matmul %5, %6, %cst {dimension_numbers = #tpu.dot_dimension_numbers<[1], [0], [0], [1], [0, 0, 1, 1], [], []>} : vector<16x32xbf16>, vector<32x32xbf16>, vector<16x32xf32> -> vector<16x32xf32>
    %8 = arith.addf %3, %7 : vector<16x32xf32>
    %c0_6 = arith.constant 0 : index
    %c0_7 = arith.constant 0 : index
    %9 = vector.load %arg7[%c0_6, %c0_7] : memref<16x32xf32, #tpu.memory_space<vmem>>, vector<16x32xf32>
    tpu.vector_store %arg7[%c0_6, %c0_7], %8 {strides = array<i32>} : memref<16x32xf32, #tpu.memory_space<vmem>>, vector<16x32xf32>,
    %c0_i32_8 = arith.constant 0 : i32
    %10 = arith.cmpi eq, %arg2, %c0_i32_8 : i32
    %11 = arith.extui %10 : i1 to i32
    %c0_i32_9 = arith.constant 0 : i32
    %12 = arith.cmpi ne, %11, %c0_i32_9 : i32
    scf.if %12 {
      %c0_10 = arith.constant 0 : index
      %c0_11 = arith.constant 0 : index
      %13 = vector.load %arg7[%c0_10, %c0_11] : memref<16x32xf32, #tpu.memory_space<vmem>>, vector<16x32xf32>
      %c0_12 = arith.constant 0 : index
      %c0_13 = arith.constant 0 : index
      %14 = vector.load %arg5[%c0_12, %c0_13] : memref<1x32xf32, #tpu.memory_space<vmem>>, vector<1x32xf32>
      %15 = vector.broadcast %14 : vector<1x32xf32> to vector<16x32xf32>
      %16 = arith.addf %13, %15 : vector<16x32xf32>
      %cst_14 = arith.constant 0.000000e+00 : f32
      %17 = vector.broadcast %cst_14 : f32 to vector<16x32xf32>
      %18 = arith.maximumf %16, %17 : vector<16x32xf32>
      %19 = arith.truncf %18 : vector<16x32xf32> to vector<16x32xbf16>
      %c0_15 = arith.constant 0 : index
      %c0_16 = arith.constant 0 : index
      %20 = vector.load %arg6[%c0_15, %c0_16] : memref<16x32xbf16, #tpu.memory_space<vmem>>, vector<16x32xbf16>
      tpu.vector_store %arg6[%c0_15, %c0_16], %19 {strides = array<i32>} : memref<16x32xbf16, #tpu.memory_space<vmem>>, vector<16x32xbf16>,
    } else {
    }
    return
  }
  func.func @transform_0(%arg0: i32, %arg1: i32, %arg2: i32) -> (i32, i32) {
    %c0_i32 = arith.constant 0 : i32
    return %arg0, %arg2 : i32, i32
  }
  func.func @transform_1(%arg0: i32, %arg1: i32, %arg2: i32) -> (i32, i32) {
    %c0_i32 = arith.constant 0 : i32
    return %arg2, %arg1 : i32, i32
  }
  func.func @transform_2(%arg0: i32, %arg1: i32, %arg2: i32) -> (i32, i32) {
    %c0_i32 = arith.constant 0 : i32
    %c0_i32_0 = arith.constant 0 : i32
    return %c0_i32, %arg1 : i32, i32
  }
  func.func @transform_3(%arg0: i32, %arg1: i32, %arg2: i32) -> (i32, i32) {
    %c0_i32 = arith.constant 0 : i32
    return %arg0, %arg1 : i32, i32
  }
}

</mosaic_0001>

<bundles_post_ra>
// kernel: stander_encoder_forward.12
= control target key start
LH: loop header
LB: loop body
LE: loop exit
PB: predicated region body
PF: predicated region fallthrough
CT: control target
= control target key end

     0   :  { %v246_v0 = vmov 0.0   ;;  %vm247_vm0 = vmmov 0   ;;  %v248_v3 = vmov 0   ;;  %vm71_vm1 = vcmask 261120   ;;  %s300_s1 = inlined_call_operand.vmem [shape: bf16[32,384], index: 1, kind: input, shape index: {}]   ;;  %s301_s0 = inlined_call_operand.vmem [shape: f32[16,32], index: 0, kind: input, shape index: {}]   ;;  %s302_s2 = inlined_call_operand.vmem [shape: bf16[16,384], index: 2, kind: output, shape index: {}]  }
   0x1   :  { %227 = vmatprep.subr.bf16.mxu1 %v246_v0  ;;  %v238_v1 = vld [vmem:[%s300_s1 + $0x1c] ss:$12 sps:$4 sm:$0xff]   ;;  %231 = vmatprep.mubr.msk.bf16.mxu1 %vm247_vm0, %v246_v0  ;;  %v240_v2 = vld [vmem:[%s300_s1 + $0x20] ss:$12 sps:$4 sm:$0xff]   ;;  %v241_v4 = vld [vmem:[%s300_s1 + $0x18] ss:$12 sps:$4 sm:$0xff]  }
   0x2   :  { %107 = vmatprep.mubr.bf16.mxu0 %v248_v3  ;;  %87 = vmatprep.subr.bf16.mxu0 %v238_v1  ;;  %v242_v5 = vld [vmem:[%s300_s1 + $0x4] ss:$12 sps:$4 sm:$0xff]   ;;  %v244_v6 = vld [vmem:[%s300_s1 + $0x8] ss:$12 sps:$4 sm:$0xff]   ;;  %v245_v7 = vld [vmem:[%s300_s1] ss:$12 sps:$4 sm:$0xff]  }
   0x3   :  { %228 = vmatpush3.bf16.msra.mxu1 %v240_v2  ;;  %88 = vmatpush1.bf16.msra.mxu0 %v241_v4  ;;  %v28_v8 = vld [vmem:[%s301_s0] sm:$0xff]  ;;  %v29_v9 = vld [vmem:[%s301_s0 + $0x8] sm:$0xff] }
   0x4   :  { %229 = vmatprep.subr.bf16.mxu1 %v246_v0  ;;  %89 = vmatprep.subr.bf16.mxu0 %v242_v5  ;;  %v30_v10 = vpack.c.bf16 %v29_v9, %v28_v8 }
   0x7   :  { %230 = vmatpush3.bf16.msra.mxu1 %v244_v6  ;;  %90 = vmatpush1.bf16.msra.mxu0 %v245_v7 }
   0xa   :  { %232 = vmatmul.mubr.msk.bf16.vlgmr.msra.gmra.mxu1 %vm71_vm1, %v30_v10  ;;  %214 = vmatmul.mubr.msk.bf16.vlgmr.msra.gmra.mxu0 %vm71_vm1, %v30_v10 }
  0xca   :  { %v152_v11 = vpop.f32.mrf.mxu1  ;;  %v109_v13 = vpop.f32.mrf.mxu0 }
  0xcb   :  { %v221_v12 = vpack.c.bf16 %v152_v11, %v152_v11 }
  0xcc   :  { %v233_v14 = vpop.f32.mrf.mxu1  ;;  %v111_v15 = vpop.f32.mrf.mxu0 }
  0xcd   :  { %201 = vst [vmem:[%s302_s2 + $0x8] sm:$0xf] %v221_v12  ;;  %v220_v16 = vpack.c.bf16 %v111_v15, %v109_v13 }
  0xce   :  { %v155_v17 = vpop.f32.mrf.mxu1  ;;  %v113_v19 = vpop.f32.mrf.mxu0 }
  0xcf   :  { %v223_v18 = vpack.c.bf16 %v155_v17, %v155_v17  ;;  %200 = vst [vmem:[%s302_s2] sm:$0xff] %v220_v16 }
  0xd0   :  { %v234_v20 = vpop.f32.mrf.mxu1  ;;  %v115_v21 = vpop.f32.mrf.mxu0 }
  0xd1   :  { %203 = vst [vmem:[%s302_s2 + $0x14] sm:$0xf] %v223_v18  ;;  %v222_v22 = vpack.c.bf16 %v115_v21, %v113_v19 }
  0xd3   :  { %202 = vst [vmem:[%s302_s2 + $0xc] sm:$0xff] %v222_v22 }

// kernel: stander_encoder_forward.11
= control target key start
LH: loop header
LB: loop body
LE: loop exit
PB: predicated region body
PF: predicated region fallthrough
CT: control target
= control target key end

     0   :  { %11 = vsyncpa [#allocation3], 0  ;;  %s837_s0 = inlined_call_operand.vmem [shape: f32[2,8,16], index: 0, kind: input, shape index: {}]   ;;  %s838_s1 = inlined_call_operand.hbm [shape: bf16[16,32], index: 1, kind: input, shape index: {}]   ;;  %s839_s2 = inlined_call_operand.hbm [shape: f32[1,32], index: 2, kind: input, shape index: {}]   ;;  %s840_s3 = inlined_call_operand.vmem [shape: f32[8,32], index: 3, kind: input, shape index: {}]   ;;  %s841_s4 = inlined_call_operand.vmem [shape: f32[1,32], index: 4, kind: input, shape index: {}]   ;;  %s842_s5 = inlined_call_operand.vmem [shape: f32[1,32], index: 5, kind: input, shape index: {}]   ;;  %s843_s6 = inlined_call_operand.vmem [shape: f32[2,8,32], index: 6, kind: output, shape index: {}]  }
   0x1   :  { %12 = vsyncpa [#allocation5], 0  ;;  %s736_s21 = smov 0   ;;  %s738_s22 = smov 0  }
   0x2   :  { %s740_s23 = smov 0  }
   0x3 LB: > { %s532_s24 = sadd.s32 4294967295, %s693_s23   ;;  %s30_s25 = sadd.s32 1, %s689_s22  ;;  %s693_s23 = sphi %s740_s23, %s18_s23   ;;  %s689_s22 = sphi %s738_s22, %s848_s22   ;;  %s685_s21 = sphi %s736_s21, %s847_s21  }
   0x4   : > { %p32_p0 = scmp.ge.s32.totalorder %s30_s25, 2  ;;  %p534_p1 = scmp.ge.s32.totalorder %s693_s23, 1 }
   0x5   : > { %p201_p2 = scmp.lt.s32.totalorder %s693_s23, 3  ;;  %p761_p4 = scmp.eq.s32.totalorder %s532_s24, 0 }
   0x6   : > { %s850_s25 = smov (%p32_p0, %s30_s25), 0  ;;  %s695_s28 = smov [#allocation2]  }
   0x7   : > { %p757_p3 = pnand %p534_p1, %p201_p2  ;;  %s213_s29 = sshll.u32 %s695_s28, 4  ;;  %s214_s29 = int_to_ptr.vmem [resolvable:$true] %s213_s29 }
   0x8   : > { %s696_s7 = smov [#allocation4]   ;;  %s622_s9 = scalar_lea.vmem %s214_s29, 128 }
   0x9   : > { %p567_p5 = pneg %p757_p3  ;;  %s227_s8 = sshll.u32 %s696_s7, 4  ;;  %s228_s8 = int_to_ptr.vmem [resolvable:$true] %s227_s8 }
   0xa   : > { %p623_p8 = scmp.ne.s32.totalorder %s214_s29, %s622_s9  ;;  %p630_p11 = scmp.lt.s32.totalorder %s214_s29, %s214_s29 }
   0xb   : > { %p769_p6 = pnand %p761_p4, %p567_p5  ;;  %p631_p12 = scmp.lt.s32.totalorder %s622_s9, %s622_s9 }
   0xd   : > { %p613_p7 = pneg %p769_p6  ;;  %p632_p13 = por %p631_p12, %p630_p11 }
   0xf   : > { %p625_p9 = pnand %p623_p8, %p613_p7 }
  0x11   : > { %p626_p10 = pneg %p625_p9 }
  0x13   : > { %p633_p0 = pnand %p632_p13, %p626_p10 }
  0x15   : > { %636 = shalt.err (!%p633_p0)
}
  0x16   : > { %s697_s10 = smov 64   ;;  %s698_s11 = smov 4  }
  0x17   : > { %570 = dma.hbm_to_vmem [thread:$0]  (!%p769_p6), %s838_s1, 128, %s214_s29, [#allocation3], %s697_s10, %s697_s10, %s698_s11  }
  0x18   : > { %s648_s14 = scalar_lea.vmem %s228_s8, 16  ;;  %s655_s15 = scalar_lea.vmem %s228_s8, 32 }
  0x19   : > { %p649_p1 = scmp.ne.s32.totalorder %s228_s8, %s648_s14  ;;  %p656_p8 = scmp.lt.s32.totalorder %s228_s8, %s228_s8 }
  0x1a   : > { %p657_p9 = scmp.lt.s32.totalorder %s655_s15, %s648_s14 }
  0x1b   : > { %p651_p2 = pnand %p649_p1, %p613_p7 }
  0x1c   : > { %p658_p10 = por %p657_p9, %p656_p8 }
  0x1d   : > { %p652_p5 = pneg %p651_p2 }
  0x1f   : > { %p659_p11 = pnand %p658_p10, %p652_p5 }
  0x21   : > { %662 = shalt.err (!%p659_p11)
}
  0x22   : > { %573 = dma.hbm_to_vmem [thread:$0]  (!%p769_p6), %s839_s2, 16, %s228_s8, [#allocation5]  }
  0x23   : > { %263 = sbr.rel (%p757_p3) target bundleno = 559 (0x22f), region = 44 }
  0x28   : > { %676 = dma.done.wait (%p761_p4), [#allocation3], 128  }
  0x29   : > { %678 = vsyncadd (%p761_p4), [#allocation3], 4294967168 }
  0x2a   : > { %680 = dma.done.wait (%p761_p4), [#allocation5], 16  }
  0x2b   : > { %682 = vsyncadd (%p761_p4), [#allocation5], 4294967280  ;;  %p305_p7 = scmp.lt.s32.totalorder %s685_s21, 1  ;;  %v699_v0 = vmov 0.0   ;;  %vm700_vm0 = vmmov 0   ;;  %v608_v1 = vld [vmem:[#allocation2] sm:$0xff]  }
  0x2c   : > { %553 = vmatprep.subr.bf16.mxu0 %v699_v0  ;;  %555 = vmatprep.mubr.msk.bf16.mxu0 %vm700_vm0, %v699_v0  ;;  %vm341_vm1 = vcmask 130048   ;;  %v544_v4 = vld [vmem:[#allocation4] ss:$0 sm:$0xff]  ;;  %v386_v8 = vld [vmem:[%s840_s3] sm:$0xff]  ;;  %vm388_vm2 = vcmask 261120  }
  0x2d   : > { %s852_s21 = smov (!%p305_p7, %s685_s21), 1  ;;  %554 = vmatpush3.bf16.msra.mxu0 %v608_v1  ;;  %v547_v23 = vld [vmem:[%s841_s4] ss:$0 sm:$0xff] }
  0x2e   : > { %s542_s18 = sshll.u32 %s852_s21, 3  ;;  %v548_v25 = vld [vmem:[%s842_s5] ss:$0 sm:$0xff] }
  0x2f   : > { %s311_s24 = scalar_lea.vmem %s837_s0, %s542_s18  ;;  %s322_s10 = scalar_lea.vmem %s843_s6, %s542_s18 }
  0x30   : > { %v324_v2 = vld [vmem:[%s311_s24] sm:$0xff] }
  0x31   : > { %v325_v3 = vpack.c.bf16 %v324_v2, %v324_v2 }
  0x33   : > { %556 = vmatmul.mubr.msk.bf16.vlgmr.msra.gmra.mxu0 %vm341_vm1, %v325_v3 }
  0xf3   : > { %v379_v5 = vpop.f32.mrf.mxu0 }
  0xf4   : > { %v380_v6 = vadd.f32 %v544_v4, %v379_v5 }
  0xf5   : > { %v557_v7 = vpop.f32.mrf.mxu0 }
  0xf6   : > { %v385_v9 = vmax.f32 %v380_v6, 0.0 }
  0xf7   : > { %v382_v10 = vpop.f32.mrf.mxu0 }
  0xf8   : > { %v387_v11 = vadd.f32 %v386_v8, %v385_v9 }
  0xf9   : > { %v558_v12 = vpop.f32.mrf.mxu0 }
  0xfa   : > { %v389_v13 = vsel %vm388_vm2, %v387_v11, 0.0 }
  0xfb   : > { %390 = vadd.xlane.f32.xlu0 %v389_v13 }
 0x184   : > { %v391_v14 = vpop.xlane.xlu0 %390 }
 0x185   : > { %v393_v15 = vmul.f32 0.03125, %v391_v14 }
 0x187   : > { %v394_v16 = vsub.f32 %v387_v11, %v393_v15 }
 0x189   : > { %v395_v17 = vmul.f32 %v394_v16, %v394_v16 }
 0x18b   : > { %v396_v18 = vsel %vm388_vm2, %v395_v17, 0.0 }
 0x18c   : > { %397 = vadd.xlane.f32.xlu0 %v396_v18 }
 0x215   : > { %v398_v19 = vpop.xlane.xlu0 %397 }
 0x216   : > { %v399_v20 = vmul.f32 0.03125, %v398_v19 }
 0x218   : > { %v400_v21 = vadd.f32 1e-06, %v399_v20 }
 0x21a   : > { %609 = vrsqrt.f32 %v400_v21 }
 0x227   : > { %v610_v22 = vpop.eup %609 }
 0x228   : > { %v402_v24 = vmul.f32 %v610_v22, %v394_v16 }
 0x22a   : > { %v410_v26 = vmul.f32 %v547_v23, %v402_v24 }
 0x22c   : > { %v418_v27 = vadd.f32 %v548_v25, %v410_v26 }
 0x22e   : > { %419 = vst.msk [vmem:[%s322_s10] sm:$0xff] %vm388_vm2, %v418_v27 }
 0x22f PF: > { %s18_s23 = sadd.s32 1, %s693_s23   ;;  %s847_s21 = smov %s689_s22 }
 0x230   : > { %p15_p3 = scmp.ge.s32.totalorder %s18_s23, 4   ;;  %s848_s22 = smov %s850_s25 }
 0x232   :  { %17 = sbr.rel (!%p15_p3) target bundleno = 3 (0x3), region = 86 }
 0x237   :  { %445 = vsyncpa [#allocation3], 1 }
 0x238   :  { %447 = vsyncpa [#allocation3 + $0x1], 1 }
 0x239   :  { %448 = vsyncpa [#allocation5], 1 }

// kernel: stander_encoder_forward.13
= control target key start
LH: loop header
LB: loop body
LE: loop exit
PB: predicated region body
PF: predicated region fallthrough
CT: control target
= control target key end

     0   :  { %s1259_s12 = smov 0   ;;  %s1261_s13 = smov 0   ;;  %s1424_s0 = inlined_call_operand.vmem [shape: bf16[2,8,384], index: 0, kind: input, shape index: {}, may-alias: {0,1,2}]   ;;  %s1425_s1 = inlined_call_operand.vmem [shape: bf16[2,8,384], index: 1, kind: input, shape index: {}, may-alias: {0,1,2}]   ;;  %s1426_s2 = inlined_call_operand.vmem [shape: bf16[2,8,384], index: 2, kind: input, shape index: {}, may-alias: {0,1,2}]   ;;  %s1427_s3 = inlined_call_operand.vmem [shape: bf16[2,8,128], index: 3, kind: output, shape index: {}]  }
   0x1   :  { %s1263_s14 = smov 0  }
   0x2 LB: > { %s32_s15 = sadd.s32 1, %s1226_s13  ;;  %p1058_p0 = scmp.ge.s32.totalorder %s1230_s14, 1  ;;  %s1230_s14 = sphi %s1263_s14, %s13_s14   ;;  %s1226_s13 = sphi %s1261_s13, %s1429_s13   ;;  %s1222_s12 = sphi %s1259_s12, %s1428_s12  }
   0x3   : > { %p34_p1 = scmp.ge.s32.totalorder %s32_s15, 2  ;;  %p198_p2 = scmp.lt.s32.totalorder %s1230_s14, 3 }
   0x5   : > { %s1431_s15 = smov (%p34_p1, %s32_s15), 0  ;;  %p199_p3 = pnand %p1058_p0, %p198_p2 }
   0x6   : > { %p248_p4 = scmp.lt.s32.totalorder (!%p199_p3), %s1222_s12, 1  ;;  %s1236_s23 = smov (!%p199_p3), 96  }
   0x7   : > { %202 = sbr.rel (%p199_p3) target bundleno = 1414 (0x586), region = 32  ;;  %s1237_s24 = smov (!%p199_p3), 64  }
   0x8   : > { %s1238_s25 = smov (!%p199_p3), 32  }
   0xc   : > { %vm298_vm0 = vcmask 261120   ;;  %v1232_v0 = vmov 0.0   ;;  %vm1233_vm1 = vmmov 0   ;;  %s1433_s12 = smov (!%p248_p4, %s1222_s12), 1  ;;  %vm289_vm2 = vcmask 7168  }
   0xd   : > { %1100 = vmatprep.subr.bf16.mxu0 %v1232_v0  ;;  %299 = vst.msk [vmem:[#allocation4] sm:$0xff] %vm298_vm0, %v1232_v0  ;;  %300 = vst.msk [vmem:[#allocation4 + $0x8] sm:$0xff] %vm298_vm0, %v1232_v0  ;;  %1102 = vmatprep.mubr.msk.bf16.mxu0 %vm1233_vm1, %v1232_v0  ;;  %s1294_s16 = smul.u32 12, %s1433_s12  ;;  %v1234_v4 = vmov -inf   ;;  %vm355_vm3 = vcmask 64512   ;;  %v1235_v11 = vmov 0  }
   0xe   : > { %301 = vst.msk [vmem:[#allocation4 + $0x10] sm:$0xff] %vm298_vm0, %v1232_v0  ;;  %302 = vst.msk [vmem:[#allocation4 + $0x18] sm:$0xff] %vm298_vm0, %v1232_v0  ;;  %1106 = vmatprep.subr.bf16.mxu1 %v1232_v0  ;;  %1108 = vmatprep.mubr.msk.bf16.mxu1 %vm1233_vm1, %v1232_v0  ;;  %vm383_vm4 = vcmask 1043456   ;;  %s1062_s29 = sshll.u32 %s1433_s12, 2  ;;  %vm867_vm5 = vcmask 257024   ;;  %vm885_vm6 = vcmask 519424  }
   0xf   : > { %s994_s19 = scalar_lea.vmem %s1425_s1, %s1294_s16  ;;  %s256_s22 = scalar_lea.vmem %s1424_s0, %s1294_s16  ;;  %290 = vst.msk [vmem:[#allocation2] sm:$0xff] %vm289_vm2, %v1234_v4  ;;  %291 = vst.msk [vmem:[#allocation2 + $0x8] sm:$0xff] %vm289_vm2, %v1234_v4  ;;  %1180 = vset.pattern.permute.xlu0 %v1235_v11  ;;  %1181 = vset.pattern.permute.xlu1 %v1235_v11  ;;  %vm903_vm7 = vcmask 781824   ;;  %vm921_vm8 = vcmask 1044224  }
  0x10   : > { %v1063_v1 = vld [vmem:[%s994_s19 + $0x4] sm:$0xf]  ;;  %v303_v3 = vld [vmem:[%s256_s22] sm:$0xf]  ;;  %292 = vst.msk [vmem:[#allocation2 + $0x10] sm:$0xff] %vm289_vm2, %v1234_v4  ;;  %293 = vst.msk [vmem:[#allocation2 + $0x18] sm:$0xff] %vm289_vm2, %v1234_v4  ;;  %s1000_s28 = scalar_lea.vmem %s1426_s2, %s1294_s16  ;;  %s283_s5 = scalar_lea.vmem %s1427_s3, %s1062_s29 }
  0x11   : > { %v311_v2 = vsel %vm298_vm0, %v1063_v1, 0  ;;  %294 = vst.msk [vmem:[#allocation3] sm:$0xff] %vm289_vm2, %v1232_v0  ;;  %295 = vst.msk [vmem:[#allocation3 + $0x8] sm:$0xff] %vm289_vm2, %v1232_v0  ;;  %v1068_v12 = vcombine.low %v1063_v1, %v1063_v1  ;;  %v1067_v13 = vcombine.low %v303_v3, %v303_v3  ;;  %v1342_v18 = vld [vmem:[%s1000_s28 + $0x8] sm:$0xf] }
  0x12   : > { %1101 = vmatpush3.bf16.xpose.msra.mxu0 %v311_v2  ;;  %296 = vst.msk [vmem:[#allocation3 + $0x10] sm:$0xff] %vm289_vm2, %v1232_v0  ;;  %297 = vst.msk [vmem:[#allocation3 + $0x18] sm:$0xff] %vm289_vm2, %v1232_v0  ;;  %v385_v19 = vsel %vm383_vm4, %v1342_v18, 0  ;;  %v1070_v4 = vcombine.low %v1342_v18, %v1342_v18 }
  0x13   : > { %1118 = vmatprep.subr.bf16.mxu0 %v1232_v0  ;;  %445 = vrot.lane.b32.xlu1 %v1068_v12, %s1236_s23 }
  0x14   : > { %1107 = vmatpush3.bf16.msra.mxu1 %v385_v19 }
  0x15   : > { %1112 = vmatprep.subr.bf16.mxu1 %v1232_v0 }
  0x16   : > { %v1328_v14 = vld [vmem:[#allocation2] sm:$0xff]  ;;  %v495_v56 = vld [vmem:[#allocation2 + $0x8] sm:$0xff] }
  0x17   : > { %440 = vrot.lane.b32.xlu1 %v1067_v13, %s1236_s23  ;;  %v634_v60 = vld [vmem:[#allocation2 + $0x10] sm:$0xff]  ;;  %v770_v1 = vld [vmem:[#allocation2 + $0x18] sm:$0xff] }
  0x19   : > { %1103 = vmatmul.mubr.msk.bf16.vlgmr.msra.gmra.mxu0 %vm298_vm0, %v303_v3 }
  0x1a   : > { %1120 = vmatprep.mubr.msk.bf16.mxu0 %vm1233_vm1, %v1232_v0 }
  0x1b   : > { %584 = vrot.lane.b32.xlu1 %v1068_v12, %s1237_s24 }
  0x1f   : > { %582 = vrot.lane.b32.xlu1 %v1067_v13, %s1237_s24 }
  0x23   : > { %720 = vrot.lane.b32.xlu1 %v1068_v12, %s1238_s25 }
  0x27   : > { %718 = vrot.lane.b32.xlu1 %v1067_v13, %s1238_s25 }
  0x85   : > { %v446_v23 = vpop.permute.xlu1 %445 }
  0x86   : > { %v451_v26 = vsel %vm298_vm0, %v446_v23, 0 }
  0x89   : > { %v441_v24 = vpop.permute.xlu1 %440 }
  0x8d   : > { %v585_v28 = vpop.permute.xlu1 %584 }
  0x8e   : > { %v590_v30 = vsel %vm298_vm0, %v585_v28, 0 }
  0x91   : > { %v583_v29 = vpop.permute.xlu1 %582 }
  0x95   : > { %v721_v31 = vpop.permute.xlu1 %720 }
  0x96   : > { %v726_v32 = vsel %vm298_vm0, %v721_v31, 0 }
  0x99   : > { %v719_v33 = vpop.permute.xlu1 %718 }
  0xd9   : > { %v347_v5 = vpop.f32.mrf.mxu0 }
  0xda   : > { %v353_v6 = vmul.f32 0.17677669, %v347_v5 }
  0xdb   : > { %v1104_v7 = vpop.f32.mrf.mxu0 }
  0xdc   : > { %v356_v8 = vsel %vm355_vm3, %v353_v6, -inf }
  0xdd   : > { %357 = vmax.xlane.f32.xlu0 %v356_v8  ;;  %v350_v9 = vpop.f32.mrf.mxu0 }
  0xdf   : > { %v1105_v10 = vpop.f32.mrf.mxu0 }
 0x166   : > { %v358_v15 = vpop.xlane.xlu0 %357 }
 0x167   : > { %v1331_v16 = vmax.f32 %v1328_v14, %v358_v15 }
 0x169   : > { %v360_v17 = vsub.f32 %v1328_v14, %v1331_v16  ;;  %436 = vst.msk [vmem:[#allocation2] sm:$0xff] %vm289_vm2, %v1331_v16  ;;  %365 = vperm.xlu0 %1180, %v1331_v16  }
 0x1e4   : > { %v366_v20 = vpop.permute.xlu0 %365 }
 0x1e5   : > { %v368_v21 = vsub.f32 %v353_v6, %v366_v20 }
 0x1e7   : > { %v369_v22 = vmul.f32 1.442695, %v368_v21 }
 0x1e9   : > { %1184 = vpow2.f32 %v369_v22 }
 0x1f6   : > { %v1347_v25 = vpop.eup %1184 }
 0x1f7   : > { %v379_v27 = vpack.c.bf16 %v1347_v25, %v1347_v25  ;;  %v373_v23 = vsel %vm355_vm3, %v1347_v25, 0.0 }
 0x1f9   : > { %1109 = vmatmul.mubr.msk.bf16.vlgmr.msra.gmra.mxu1 %vm355_vm3, %v379_v27 }
 0x1fa   : > { %1113 = vmatpush3.bf16.xpose.msra.mxu1 %v451_v26  ;;  %1114 = vmatprep.mubr.msk.bf16.mxu1 %vm1233_vm1, %v1232_v0 }
 0x1fb   : > { %1124 = vmatprep.subr.bf16.mxu1 %v1232_v0 }
 0x201   : > { %1115 = vmatmul.mubr.msk.bf16.vlgmr.msra.gmra.mxu1 %vm298_vm0, %v441_v24 }
 0x202   : > { %1125 = vmatpush3.bf16.xpose.msra.mxu1 %v590_v30  ;;  %1126 = vmatprep.mubr.msk.bf16.mxu1 %vm1233_vm1, %v1232_v0 }
 0x203   : > { %1136 = vmatprep.subr.bf16.mxu1 %v1232_v0 }
 0x209   : > { %1127 = vmatmul.mubr.msk.bf16.vlgmr.msra.gmra.mxu1 %vm298_vm0, %v583_v29 }
 0x20a   : > { %1137 = vmatpush3.bf16.xpose.msra.mxu1 %v726_v32  ;;  %1138 = vmatprep.mubr.msk.bf16.mxu1 %vm1233_vm1, %v1232_v0 }
 0x211   : > { %1139 = vmatmul.mubr.msk.bf16.vlgmr.msra.gmra.mxu1 %vm298_vm0, %v719_v33 }
 0x2b9   : > { %v1366_v34 = vpop.f32.mrf.mxu1 }
 0x2bb   : > { %v1110_v35 = vpop.f32.mrf.mxu1 }
 0x2bd   : > { %v424_v36 = vpop.f32.mrf.mxu1 }
 0x2bf   : > { %v1111_v37 = vpop.f32.mrf.mxu1 }
 0x2c1   : > { %v487_v38 = vpop.f32.mrf.mxu1 }
 0x2c2   : > { %v493_v39 = vmul.f32 0.17677669, %v487_v38  ;;  %v361_v38 = vmul.f32 1.442695, %v360_v17  ;;  %v651_v17 = vld [vmem:[#allocation3 + $0x10] sm:$0xff] }
 0x2c3   : > { %v1116_v40 = vpop.f32.mrf.mxu1 }
 0x2c4   : > { %v496_v41 = vsel %vm355_vm3, %v493_v39, -inf }
 0x2c5   : > { %497 = vmax.xlane.f32.xlu1 %v496_v41  ;;  %v490_v42 = vpop.f32.mrf.mxu1 }
 0x2c6   : > { %v512_v42 = vld [vmem:[#allocation3 + $0x8] sm:$0xff] }
 0x2c7   : > { %v1117_v43 = vpop.f32.mrf.mxu1 }
 0x2c9   : > { %v626_v44 = vpop.f32.mrf.mxu1 }
 0x2ca   : > { %v632_v45 = vmul.f32 0.17677669, %v626_v44 }
 0x2cb   : > { %v1128_v46 = vpop.f32.mrf.mxu1 }
 0x2cc   : > { %v635_v47 = vsel %vm355_vm3, %v632_v45, -inf }
 0x2cd   : > { %636 = vmax.xlane.f32.xlu0 %v635_v47  ;;  %v629_v48 = vpop.f32.mrf.mxu1 }
 0x2cf   : > { %v1129_v49 = vpop.f32.mrf.mxu1 }
 0x2d1   : > { %v762_v50 = vpop.f32.mrf.mxu1 }
 0x2d2   : > { %v768_v51 = vmul.f32 0.17677669, %v762_v50 }
 0x2d3   : > { %v1140_v52 = vpop.f32.mrf.mxu1 }
 0x2d4   : > { %v771_v53 = vsel %vm355_vm3, %v768_v51, -inf  ;;  %v787_v52 = vld [vmem:[#allocation3 + $0x18] sm:$0xff] }
 0x2d5   : > { %772 = vmax.xlane.f32.xlu1 %v771_v53  ;;  %v765_v54 = vpop.f32.mrf.mxu1 }
 0x2d7   : > { %v1141_v55 = vpop.f32.mrf.mxu1 }
 0x34e   : > { %v498_v57 = vpop.xlane.xlu1 %497 }
 0x34f   : > { %v499_v58 = vmax.f32 %v495_v56, %v498_v57 }
 0x351   : > { %v500_v59 = vsub.f32 %v495_v56, %v499_v58  ;;  %581 = vst.msk [vmem:[#allocation2 + $0x8] sm:$0xff] %vm289_vm2, %v499_v58  ;;  %505 = vperm.xlu1 %1181, %v499_v58   ;;  %v427_v58 = vld [vmem:[#allocation4] sm:$0xff] }
 0x353   : > { %v501_v22 = vmul.f32 1.442695, %v500_v59 }
 0x356   : > { %v637_v61 = vpop.xlane.xlu0 %636 }
 0x357   : > { %v638_v62 = vmax.f32 %v634_v60, %v637_v61 }
 0x359   : > { %v639_v63 = vsub.f32 %v634_v60, %v638_v62  ;;  %717 = vst.msk [vmem:[#allocation2 + $0x10] sm:$0xff] %vm289_vm2, %v638_v62  ;;  %644 = vperm.xlu0 %1180, %v638_v62  }
 0x35b   : > { %v640_v29 = vmul.f32 1.442695, %v639_v63 }
 0x35e   : > { %v773_v2 = vpop.xlane.xlu1 %772 }
 0x35f   : > { %v774_v3 = vmax.f32 %v770_v1, %v773_v2 }
 0x361   : > { %v775_v5 = vsub.f32 %v770_v1, %v774_v3  ;;  %853 = vst.msk [vmem:[#allocation2 + $0x18] sm:$0xff] %vm289_vm2, %v774_v3  ;;  %780 = vperm.xlu1 %1181, %v774_v3  }
 0x363   : > { %v776_v40 = vmul.f32 1.442695, %v775_v5 }
 0x365   : > { %523 = vrot.lane.b32.xlu1 %v1070_v4, %s1236_s23 }
 0x369   : > { %659 = vrot.lane.b32.xlu1 %v1070_v4, %s1237_s24 }
 0x36d   : > { %795 = vrot.lane.b32.xlu1 %v1070_v4, %s1238_s25  ;;  %v572_v4 = vld [vmem:[#allocation4 + $0x8] sm:$0xff] }
 0x3cc   : > { %v506_v6 = vpop.permute.xlu1 %505 }
 0x3cd   : > { %v508_v7 = vsub.f32 %v493_v39, %v506_v6 }
 0x3cf   : > { %v509_v8 = vmul.f32 1.442695, %v508_v7 }
 0x3d1   : > { %1186 = vpow2.f32 %v509_v8 }
 0x3d4   : > { %v645_v9 = vpop.permute.xlu0 %644 }
 0x3d5   : > { %v647_v10 = vsub.f32 %v632_v45, %v645_v9  ;;  %v371_v45 = vld [vmem:[#allocation3] sm:$0xff] }
 0x3d7   : > { %v648_v11 = vmul.f32 1.442695, %v647_v10  ;;  %v708_v10 = vld [vmem:[#allocation4 + $0x10] sm:$0xff] }
 0x3d9   : > { %1188 = vpow2.f32 %v648_v11 }
 0x3dc   : > { %v781_v12 = vpop.permute.xlu1 %780 }
 0x3dd   : > { %v783_v13 = vsub.f32 %v768_v51, %v781_v12 }
 0x3de   : > { %v1187_v15 = vpop.eup %1186 }
 0x3df   : > { %v784_v18 = vmul.f32 1.442695, %v783_v13  ;;  %v514_v19 = vsel %vm355_vm3, %v1187_v15, 0.0  ;;  %v519_v24 = vpack.c.bf16 %v1187_v15, %v1187_v15 }
 0x3e0   : > { %515 = vadd.xlane.f32.xlu1 %v514_v19  ;;  %v524_v20 = vpop.permute.xlu1 %523 }
 0x3e1   : > { %1190 = vpow2.f32 %v784_v18  ;;  %v529_v21 = vsel %vm383_vm4, %v524_v20, 0  ;;  %v844_v20 = vld [vmem:[#allocation4 + $0x18] sm:$0xff] }
 0x3e2   : > { %1119 = vmatpush3.bf16.msra.mxu0 %v529_v21  ;;  %1192 = vpow2.f32 %v501_v22 }
 0x3e3   : > { %1130 = vmatprep.subr.bf16.mxu0 %v1232_v0  ;;  %1194 = vpow2.f32 %v640_v29 }
 0x3e4   : > { %374 = vadd.xlane.f32.xlu1 %v373_v23  ;;  %v660_v26 = vpop.permute.xlu1 %659  ;;  %1196 = vpow2.f32 %v361_v38 }
 0x3e5   : > { %1121 = vmatmul.mubr.msk.bf16.vlgmr.msra.gmra.mxu0 %vm355_vm3, %v519_v24  ;;  %v665_v27 = vsel %vm383_vm4, %v660_v26, 0  ;;  %1198 = vpow2.f32 %v776_v40 }
 0x3e6   : > { %v1189_v28 = vpop.eup %1188  ;;  %1131 = vmatpush3.bf16.msra.mxu0 %v665_v27  ;;  %1132 = vmatprep.mubr.msk.bf16.mxu0 %vm1233_vm1, %v1232_v0 }
 0x3e7   : > { %v653_v30 = vsel %vm355_vm3, %v1189_v28, 0.0  ;;  %1142 = vmatprep.subr.bf16.mxu0 %v1232_v0  ;;  %v658_v31 = vpack.c.bf16 %v1189_v28, %v1189_v28 }
 0x3e8   : > { %654 = vadd.xlane.f32.xlu0 %v653_v30  ;;  %v796_v25 = vpop.permute.xlu1 %795 }
 0x3e9   : > { %v801_v32 = vsel %vm383_vm4, %v796_v25, 0 }
 0x3ed   : > { %1133 = vmatmul.mubr.msk.bf16.vlgmr.msra.gmra.mxu0 %vm355_vm3, %v658_v31 }
 0x3ee   : > { %v1191_v33 = vpop.eup %1190  ;;  %1143 = vmatpush3.bf16.msra.mxu0 %v801_v32  ;;  %1144 = vmatprep.mubr.msk.bf16.mxu0 %vm1233_vm1, %v1232_v0 }
 0x3ef   : > { %v789_v35 = vsel %vm355_vm3, %v1191_v33, 0.0  ;;  %v794_v36 = vpack.c.bf16 %v1191_v33, %v1191_v33  ;;  %v1193_v37 = vpop.eup %1192 }
 0x3f0   : > { %790 = vadd.xlane.f32.xlu0 %v789_v35  ;;  %v1195_v39 = vpop.eup %1194  ;;  %v513_v43 = vmul.f32 %v1193_v37, %v512_v42 }
 0x3f1   : > { %v1197_v41 = vpop.eup %1196  ;;  %v652_v48 = vmul.f32 %v1195_v39, %v651_v17 }
 0x3f2   : > { %v1199_v0 = vpop.eup %1198  ;;  %v372_v14 = vmul.f32 %v1197_v41, %v371_v45 }
 0x3f3   : > { %v788_v54 = vmul.f32 %v1199_v0, %v787_v52 }
 0x3f5   : > { %1145 = vmatmul.mubr.msk.bf16.vlgmr.msra.gmra.mxu0 %vm355_vm3, %v794_v36  ;;  %575 = vperm.xlu1 %1181, %v1193_v37  }
 0x3f9   : > { %711 = vperm.xlu1 %1181, %v1195_v39  }
 0x406   : > { %430 = vperm.xlu0 %1180, %v1197_v41  }
 0x40a   : > { %847 = vperm.xlu0 %1180, %v1199_v0  }
 0x469   : > { %v516_v44 = vpop.xlane.xlu1 %515 }
 0x46a   : > { %v517_v46 = vadd.f32 %v516_v44, %v513_v43 }
 0x46c   : > { %518 = vst.msk [vmem:[#allocation3 + $0x8] sm:$0xff] %vm289_vm2, %v517_v46 }
 0x46d   : > { %v375_v16 = vpop.xlane.xlu1 %374 }
 0x46e   : > { %v376_v47 = vadd.f32 %v375_v16, %v372_v14 }
 0x470   : > { %378 = vst.msk [vmem:[#allocation3] sm:$0xff] %vm289_vm2, %v376_v47 }
 0x471   : > { %v655_v49 = vpop.xlane.xlu0 %654  ;;  %v576_v5 = vpop.permute.xlu1 %575 }
 0x472   : > { %v656_v50 = vadd.f32 %v655_v49, %v652_v48  ;;  %v578_v6 = vmul.f32 %v576_v5, %v572_v4 }
 0x473   : > { %v869_v51 = vld [vmem:[#allocation3 + $0x8] sm:$0xff] }
 0x474   : > { %657 = vst.msk [vmem:[#allocation3 + $0x10] sm:$0xff] %vm289_vm2, %v656_v50  ;;  %1200 = vrcp.f32 %v869_v51 }
 0x475   : > { %v712_v11 = vpop.permute.xlu1 %711 }
 0x476   : > { %v714_v13 = vmul.f32 %v712_v11, %v708_v10 }
 0x477   : > { %v857_v53 = vld [vmem:[#allocation3] sm:$0xff] }
 0x478   : > { %1202 = vrcp.f32 %v857_v53 }
 0x479   : > { %v791_v55 = vpop.xlane.xlu0 %790 }
 0x47a   : > { %v792_v56 = vadd.f32 %v791_v55, %v788_v54 }
 0x47b   : > { %v887_v57 = vld [vmem:[#allocation3 + $0x10] sm:$0xff] }
 0x47c   : > { %793 = vst.msk [vmem:[#allocation3 + $0x18] sm:$0xff] %vm289_vm2, %v792_v56  ;;  %1204 = vrcp.f32 %v887_v57 }
 0x481   : > { %v1201_v59 = vpop.eup %1200  ;;  %v431_v60 = vpop.permute.xlu0 %430 }
 0x482   : > { %v433_v61 = vmul.f32 %v431_v60, %v427_v58  ;;  %874 = vperm.xlu0 %1180, %v1201_v59  }
 0x483   : > { %v905_v62 = vld [vmem:[#allocation3 + $0x18] sm:$0xff] }
 0x484   : > { %v434_v63 = vadd.f32 %v433_v61, %v1366_v34  ;;  %1206 = vrcp.f32 %v905_v62 }
 0x485   : > { %v1203_v1 = vpop.eup %1202  ;;  %v848_v21 = vpop.permute.xlu0 %847 }
 0x486   : > { %435 = vst.msk [vmem:[#allocation4] sm:$0xff] %vm298_vm0, %v434_v63  ;;  %862 = vperm.xlu1 %1181, %v1203_v1   ;;  %v850_v24 = vmul.f32 %v848_v21, %v844_v20 }
 0x489   : > { %v1205_v2 = vpop.eup %1204 }
 0x48a   : > { %892 = vperm.xlu0 %1180, %v1205_v2  }
 0x48d   : > { %v859_v35 = vld [vmem:[#allocation4] sm:$0xff] }
 0x491   : > { %v1207_v3 = vpop.eup %1206 }
 0x492   : > { %910 = vperm.xlu0 %1180, %v1207_v3  }
 0x4a5   : > { %v565_v7 = vpop.f32.mrf.mxu0 }
 0x4a6   : > { %v579_v8 = vadd.f32 %v578_v6, %v565_v7 }
 0x4a7   : > { %v1122_v9 = vpop.f32.mrf.mxu0 }
 0x4a8   : > { %580 = vst.msk [vmem:[#allocation4 + $0x8] sm:$0xff] %vm298_vm0, %v579_v8 }
 0x4a9   : > { %v568_v34 = vpop.f32.mrf.mxu0 }
 0x4ab   : > { %v1123_v12 = vpop.f32.mrf.mxu0 }
 0x4ad   : > { %v701_v15 = vpop.f32.mrf.mxu0 }
 0x4ae   : > { %v715_v18 = vadd.f32 %v714_v13, %v701_v15 }
 0x4af   : > { %v1134_v19 = vpop.f32.mrf.mxu0  ;;  %v871_v31 = vld [vmem:[#allocation4 + $0x8] sm:$0xff] }
 0x4b0   : > { %716 = vst.msk [vmem:[#allocation4 + $0x10] sm:$0xff] %vm298_vm0, %v715_v18 }
 0x4b1   : > { %v704_v22 = vpop.f32.mrf.mxu0 }
 0x4b3   : > { %v1135_v23 = vpop.f32.mrf.mxu0 }
 0x4b5   : > { %v837_v26 = vpop.f32.mrf.mxu0 }
 0x4b6   : > { %v851_v27 = vadd.f32 %v850_v24, %v837_v26 }
 0x4b7   : > { %v1146_v28 = vpop.f32.mrf.mxu0  ;;  %v889_v40 = vld [vmem:[#allocation4 + $0x10] sm:$0xff] }
 0x4b8   : > { %852 = vst.msk [vmem:[#allocation4 + $0x18] sm:$0xff] %vm298_vm0, %v851_v27 }
 0x4b9   : > { %v840_v29 = vpop.f32.mrf.mxu0 }
 0x4bb   : > { %v1147_v30 = vpop.f32.mrf.mxu0 }
 0x4bf   : > { %v907_v43 = vld [vmem:[#allocation4 + $0x18] sm:$0xff] }
 0x4fd   : > { %v875_v25 = vpop.permute.xlu0 %874 }
 0x4fe   : > { %v877_v32 = vmul.f32 %v875_v25, %v871_v31 }
 0x500   : > { %v1081_v33 = vpack.c.bf16 %v877_v32, %v877_v32 }
 0x501   : > { %v863_v36 = vpop.permute.xlu1 %862 }
 0x502   : > { %v865_v37 = vmul.f32 %v863_v36, %v859_v35  ;;  %882 = vrot.lane.b32.xlu1 %v1081_v33, %s1238_s25 }
 0x504   : > { %v866_v38 = vpack.c.bf16 %v865_v37, %v865_v37 }
 0x505   : > { %v893_v39 = vpop.permute.xlu0 %892 }
 0x506   : > { %868 = vst.msk [vmem:[%s283_s5] sm:$0xf] %vm867_vm5, %v866_v38  ;;  %v895_v41 = vmul.f32 %v893_v39, %v889_v40 }
 0x508   : > { %v1082_v0 = vpack.c.bf16 %v895_v41, %v895_v41 }
 0x50a   : > { %900 = vrot.lane.b32.xlu1 %v1082_v0, %s1237_s24 }
 0x50d   : > { %v911_v42 = vpop.permute.xlu0 %910 }
 0x50e   : > { %v913_v44 = vmul.f32 %v911_v42, %v907_v43 }
 0x510   : > { %v1083_v45 = vpack.c.bf16 %v913_v44, %v913_v44 }
 0x512   : > { %918 = vrot.lane.b32.xlu1 %v1083_v45, %s1236_s23 }
 0x574   : > { %v883_v46 = vpop.permute.xlu1 %882 }
 0x575   : > { %886 = vst.msk [vmem:[%s283_s5] sm:$0xf] %vm885_vm6, %v883_v46 }
 0x57c   : > { %v901_v14 = vpop.permute.xlu1 %900 }
 0x57d   : > { %904 = vst.msk [vmem:[%s283_s5] sm:$0xf] %vm903_vm7, %v901_v14 }
 0x584   : > { %v919_v16 = vpop.permute.xlu1 %918 }
 0x585   : > { %922 = vst.msk [vmem:[%s283_s5] sm:$0xf] %vm921_vm8, %v919_v16 }
 0x586 PF: > { %s13_s14 = sadd.s32 1, %s1230_s14   ;;  %s1428_s12 = smov %s1226_s13 }
 0x587   : > { %p10_p5 = scmp.ge.s32.totalorder %s13_s14, 4   ;;  %s1429_s13 = smov %s1431_s15 }
 0x589   :  { %12 = sbr.rel (!%p10_p5) target bundleno = 2 (0x2), region = 85 }

// kernel: stander_encoder_forward.14
= control target key start
LH: loop header
LB: loop body
LE: loop exit
PB: predicated region body
PF: predicated region fallthrough
CT: control target
= control target key end

     0   :  { %vm25_vm0 = vcmask 261120   ;;  %v263_v0 = vmov 0.0   ;;  %vm264_vm1 = vmmov 0   ;;  %s350_s1 = inlined_call_operand.vmem [shape: bf16[128,32], index: 1, kind: input, shape index: {}]   ;;  %s351_s0 = inlined_call_operand.vmem [shape: bf16[16,128], index: 0, kind: input, shape index: {}]   ;;  %s352_s2 = inlined_call_operand.vmem [shape: f32[16,32], index: 2, kind: input, shape index: {}]   ;;  %s353_s3 = inlined_call_operand.vmem [shape: f32[1,32], index: 3, kind: input, shape index: {}]   ;;  %s354_s4 = inlined_call_operand.vmem [shape: f32[1,32], index: 4, kind: input, shape index: {}]   ;;  %s355_s5 = inlined_call_operand.vmem [shape: f32[16,32], index: 5, kind: output, shape index: {}]  }
   0x1   :  { %228 = vmatprep.subr.bf16.mxu0 %v263_v0  ;;  %v250_v1 = vld [vmem:[%s350_s1 + $0x38] sm:$0xff]   ;;  %244 = vmatprep.mubr.msk.bf16.mxu0 %vm264_vm1, %v263_v0  ;;  %26 = vst.msk [vmem:[#allocation2] sm:$0xff] %vm25_vm0, %v263_v0  ;;  %27 = vst.msk [vmem:[#allocation2 + $0x8] sm:$0xff] %vm25_vm0, %v263_v0  ;;  %v251_v2 = vld [vmem:[%s350_s1 + $0x30] sm:$0xff]  }
   0x2   :  { %229 = vmatpush3.bf16.msra.mxu0 %v250_v1  ;;  %v252_v3 = vld [vmem:[%s350_s1 + $0x28] sm:$0xff]   ;;  %v253_v4 = vld [vmem:[%s350_s1 + $0x20] sm:$0xff]   ;;  %v254_v5 = vld [vmem:[%s350_s1 + $0x18] sm:$0xff]  }
   0x3   :  { %230 = vmatprep.subr.bf16.mxu0 %v263_v0  ;;  %v255_v6 = vld [vmem:[%s350_s1 + $0x10] sm:$0xff]   ;;  %v256_v7 = vld [vmem:[%s350_s1 + $0x8] sm:$0xff]   ;;  %v257_v8 = vld [vmem:[%s350_s1] sm:$0xff]  }
   0x4   :  { %v258_v9 = vld [vmem:[%s351_s0] sm:$0xff]   ;;  %v154_v21 = vld [vmem:[%s352_s2 + $0x8] sm:$0xff] }
   0x5   :  { %v153_v18 = vld [vmem:[%s352_s2] sm:$0xff] }
   0x6   :  { %231 = vmatpush3.bf16.msra.mxu0 %v251_v2  ;;  %v217_v43 = vld [vmem:[%s353_s3] ss:$0 sm:$0xff] }
   0x7   :  { %232 = vmatprep.subr.bf16.mxu0 %v263_v0  ;;  %v218_v45 = vld [vmem:[%s354_s4] ss:$0 sm:$0xff] }
   0x8   :  { %v28_v10 = vld [vmem:[#allocation2] sm:$0xff]  ;;  %v29_v14 = vld [vmem:[#allocation2 + $0x8] sm:$0xff] }
   0xa   :  { %233 = vmatpush3.bf16.msra.mxu0 %v252_v3 }
   0xb   :  { %234 = vmatprep.subr.bf16.mxu0 %v263_v0 }
   0xe   :  { %235 = vmatpush3.bf16.msra.mxu0 %v253_v4 }
   0xf   :  { %236 = vmatprep.subr.bf16.mxu0 %v263_v0 }
  0x12   :  { %237 = vmatpush3.bf16.msra.mxu0 %v254_v5 }
  0x13   :  { %238 = vmatprep.subr.bf16.mxu0 %v263_v0 }
  0x16   :  { %239 = vmatpush3.bf16.msra.mxu0 %v255_v6 }
  0x17   :  { %240 = vmatprep.subr.bf16.mxu0 %v263_v0 }
  0x1a   :  { %241 = vmatpush3.bf16.msra.mxu0 %v256_v7 }
  0x1b   :  { %242 = vmatprep.subr.bf16.mxu0 %v263_v0 }
  0x1e   :  { %243 = vmatpush3.bf16.msra.mxu0 %v257_v8 }
  0x21   :  { %245 = vmatmul.mubr.bf16.vlgmr.msra.gmra.mxu0 %v258_v9 }
  0xe1   :  { %v136_v11 = vpop.f32.mrf.mxu0 }
  0xe2   :  { %v143_v12 = vadd.f32 %v136_v11, %v28_v10 }
  0xe3   :  { %v246_v13 = vpop.f32.mrf.mxu0 }
  0xe4   :  { %146 = vst.msk [vmem:[#allocation2] sm:$0xff] %vm25_vm0, %v143_v12 }
  0xe5   :  { %v139_v15 = vpop.f32.mrf.mxu0 }
  0xe6   :  { %v144_v16 = vadd.f32 %v139_v15, %v29_v14 }
  0xe7   :  { %v247_v17 = vpop.f32.mrf.mxu0 }
  0xe8   :  { %147 = vst.msk [vmem:[#allocation2 + $0x8] sm:$0xff] %vm25_vm0, %v144_v16 }
  0xeb   :  { %v151_v19 = vld [vmem:[#allocation2] sm:$0xff] }
  0xec   :  { %v155_v20 = vadd.f32 %v153_v18, %v151_v19 }
  0xee   :  { %v157_v22 = vsel %vm25_vm0, %v155_v20, 0.0 }
  0xef   :  { %158 = vadd.xlane.f32.xlu0 %v157_v22  ;;  %v152_v23 = vld [vmem:[#allocation2 + $0x8] sm:$0xff] }
  0xf0   :  { %v156_v24 = vadd.f32 %v154_v21, %v152_v23 }
  0xf2   :  { %v160_v25 = vsel %vm25_vm0, %v156_v24, 0.0 }
  0xf3   :  { %161 = vadd.xlane.f32.xlu0 %v160_v25 }
 0x178   :  { %v159_v26 = vpop.xlane.xlu0 %158 }
 0x179   :  { %v164_v27 = vmul.f32 0.03125, %v159_v26 }
 0x17b   :  { %v166_v28 = vsub.f32 %v155_v20, %v164_v27 }
 0x17c   :  { %v162_v29 = vpop.xlane.xlu0 %161 }
 0x17d   :  { %v165_v30 = vmul.f32 0.03125, %v162_v29  ;;  %v168_v31 = vmul.f32 %v166_v28, %v166_v28 }
 0x17f   :  { %v167_v32 = vsub.f32 %v156_v24, %v165_v30  ;;  %v170_v33 = vsel %vm25_vm0, %v168_v31, 0.0 }
 0x180   :  { %171 = vadd.xlane.f32.xlu1 %v170_v33 }
 0x181   :  { %v169_v34 = vmul.f32 %v167_v32, %v167_v32 }
 0x183   :  { %v173_v35 = vsel %vm25_vm0, %v169_v34, 0.0 }
 0x184   :  { %174 = vadd.xlane.f32.xlu1 %v173_v35 }
 0x209   :  { %v172_v36 = vpop.xlane.xlu1 %171 }
 0x20a   :  { %v176_v37 = vmul.f32 0.03125, %v172_v36 }
 0x20c   :  { %v178_v38 = vadd.f32 1e-06, %v176_v37 }
 0x20d   :  { %v175_v39 = vpop.xlane.xlu1 %174 }
 0x20e   :  { %259 = vrsqrt.f32 %v178_v38  ;;  %v177_v40 = vmul.f32 0.03125, %v175_v39 }
 0x210   :  { %v179_v41 = vadd.f32 1e-06, %v177_v40 }
 0x212   :  { %261 = vrsqrt.f32 %v179_v41 }
 0x21b   :  { %v260_v42 = vpop.eup %259 }
 0x21c   :  { %v182_v44 = vmul.f32 %v260_v42, %v166_v28 }
 0x21e   :  { %v191_v46 = vmul.f32 %v217_v43, %v182_v44 }
 0x21f   :  { %v262_v47 = vpop.eup %261 }
 0x220   :  { %v200_v48 = vadd.f32 %v218_v45, %v191_v46  ;;  %v183_v49 = vmul.f32 %v262_v47, %v167_v32 }
 0x222   :  { %202 = vst.msk [vmem:[%s355_s5] sm:$0xff] %vm25_vm0, %v200_v48  ;;  %v192_v50 = vmul.f32 %v217_v43, %v183_v49 }
 0x224   :  { %v201_v51 = vadd.f32 %v218_v45, %v192_v50 }
 0x226   :  { %203 = vst.msk [vmem:[%s355_s5 + $0x8] sm:$0xff] %vm25_vm0, %v201_v51 }

// kernel: stander_encoder_forward.21
= control target key start
LH: loop header
LB: loop body
LE: loop exit
PB: predicated region body
PF: predicated region fallthrough
CT: control target
= control target key end

     0   :  { %v239_v1 = vmov 0.0   ;;  %vm240_vm0 = vmmov 0   ;;  %vm29_vm1 = vcmask 261120   ;;  %s317_s0 = inlined_call_operand.vmem [shape: bf16[16,32], index: 0, kind: input, shape index: {}]   ;;  %s318_s1 = inlined_call_operand.vmem [shape: bf16[32,32], index: 1, kind: input, shape index: {}]   ;;  %s319_s2 = inlined_call_operand.vmem [shape: f32[1,32], index: 2, kind: input, shape index: {}]   ;;  %s320_s3 = inlined_call_operand.vmem [shape: f32[16,32], index: 3, kind: input, shape index: {}]   ;;  %s321_s4 = inlined_call_operand.vmem [shape: f32[1,32], index: 4, kind: input, shape index: {}]   ;;  %s322_s5 = inlined_call_operand.vmem [shape: f32[1,32], index: 5, kind: input, shape index: {}]   ;;  %s323_s6 = inlined_call_operand.hbm [shape: f32[16,32], index: 6, kind: output, shape index: {}]  }
   0x1   :  { %v210_v0 = vld [vmem:[%s318_s1 + $0x8] sm:$0xff]   ;;  %197 = vmatprep.subr.bf16.mxu0 %v239_v1  ;;  %v211_v2 = vld [vmem:[%s318_s1] sm:$0xff]   ;;  %201 = vmatprep.mubr.msk.bf16.mxu0 %vm240_vm0, %v239_v1  ;;  %30 = vst.msk [vmem:[#allocation2] sm:$0xff] %vm29_vm1, %v239_v1  ;;  %31 = vst.msk [vmem:[#allocation2 + $0x8] sm:$0xff] %vm29_vm1, %v239_v1 }
   0x2   :  { %198 = vmatpush3.bf16.msra.mxu0 %v210_v0 }
   0x3   :  { %199 = vmatprep.subr.bf16.mxu0 %v239_v1 }
   0x4   :  { %11 = vsyncpa [#allocation4], 0  ;;  %v212_v3 = vld [vmem:[%s317_s0] sm:$0xff]   ;;  %v121_v18 = vld [vmem:[%s320_s3 + $0x8] sm:$0xff]  ;;  %s241_s9 = smov [#allocation3]  }
   0x5   :  { %v191_v12 = vld [vmem:[%s319_s2] ss:$0 sm:$0xff]  ;;  %s176_s10 = sshll.u32 %s241_s9, 4  ;;  %s177_s10 = int_to_ptr.vmem [resolvable:$true] %s176_s10 }
   0x6   :  { %200 = vmatpush3.bf16.msra.mxu0 %v211_v2  ;;  %v120_v14 = vld [vmem:[%s320_s3] sm:$0xff]  ;;  %s217_s11 = scalar_lea.vmem %s177_s10, 256  ;;  %p222_p1 = scmp.lt.s32.totalorder %s177_s10, %s177_s10 }
   0x7   :  { %v192_v40 = vld [vmem:[%s321_s4] ss:$0 sm:$0xff]  ;;  %p218_p0 = scmp.ne.s32.totalorder %s177_s10, %s217_s11  ;;  %p223_p2 = scmp.lt.s32.totalorder %s217_s11, %s217_s11 }
   0x8   :  { %v32_v4 = vld [vmem:[#allocation2] sm:$0xff]  ;;  %v33_v8 = vld [vmem:[#allocation2 + $0x8] sm:$0xff] }
   0x9   :  { %202 = vmatmul.mubr.msk.bf16.vlgmr.msra.gmra.mxu0 %vm29_vm1, %v212_v3  ;;  %v193_v42 = vld [vmem:[%s322_s5] ss:$0 sm:$0xff]  ;;  %p224_p3 = por %p223_p2, %p222_p1 }
   0xb   :  { %p225_p4 = pnand %p224_p3, %p218_p0 }
  0xc9   :  { %v95_v5 = vpop.f32.mrf.mxu0 }
  0xca   :  { %v102_v6 = vadd.f32 %v95_v5, %v32_v4 }
  0xcb   :  { %v203_v7 = vpop.f32.mrf.mxu0 }
  0xcc   :  { %104 = vst.msk [vmem:[#allocation2] sm:$0xff] %vm29_vm1, %v102_v6 }
  0xcd   :  { %v98_v9 = vpop.f32.mrf.mxu0 }
  0xce   :  { %v103_v10 = vadd.f32 %v98_v9, %v33_v8 }
  0xcf   :  { %v204_v11 = vpop.f32.mrf.mxu0 }
  0xd0   :  { %105 = vst.msk [vmem:[#allocation2 + $0x8] sm:$0xff] %vm29_vm1, %v103_v10 }
  0xd3   :  { %v109_v13 = vld [vmem:[#allocation2] sm:$0xff] }
  0xd4   :  { %v118_v15 = vadd.f32 %v191_v12, %v109_v13 }
  0xd6   :  { %v122_v16 = vadd.f32 %v120_v14, %v118_v15 }
  0xd7   :  { %v110_v17 = vld [vmem:[#allocation2 + $0x8] sm:$0xff] }
  0xd8   :  { %v124_v19 = vsel %vm29_vm1, %v122_v16, 0.0  ;;  %v119_v20 = vadd.f32 %v191_v12, %v110_v17 }
  0xd9   :  { %125 = vadd.xlane.f32.xlu0 %v124_v19 }
  0xda   :  { %v123_v21 = vadd.f32 %v121_v18, %v119_v20 }
  0xdc   :  { %v127_v22 = vsel %vm29_vm1, %v123_v21, 0.0 }
  0xdd   :  { %128 = vadd.xlane.f32.xlu0 %v127_v22 }
 0x162   :  { %v126_v23 = vpop.xlane.xlu0 %125 }
 0x163   :  { %v131_v24 = vmul.f32 0.03125, %v126_v23 }
 0x165   :  { %v133_v25 = vsub.f32 %v122_v16, %v131_v24 }
 0x166   :  { %v129_v26 = vpop.xlane.xlu0 %128 }
 0x167   :  { %v132_v27 = vmul.f32 0.03125, %v129_v26  ;;  %v135_v28 = vmul.f32 %v133_v25, %v133_v25 }
 0x169   :  { %v134_v29 = vsub.f32 %v123_v21, %v132_v27  ;;  %v137_v30 = vsel %vm29_vm1, %v135_v28, 0.0 }
 0x16a   :  { %138 = vadd.xlane.f32.xlu1 %v137_v30 }
 0x16b   :  { %v136_v31 = vmul.f32 %v134_v29, %v134_v29 }
 0x16d   :  { %v140_v32 = vsel %vm29_vm1, %v136_v31, 0.0 }
 0x16e   :  { %141 = vadd.xlane.f32.xlu1 %v140_v32 }
 0x1f3   :  { %v139_v33 = vpop.xlane.xlu1 %138 }
 0x1f4   :  { %v143_v34 = vmul.f32 0.03125, %v139_v33 }
 0x1f6   :  { %v145_v35 = vadd.f32 1e-06, %v143_v34 }
 0x1f7   :  { %v142_v36 = vpop.xlane.xlu1 %141 }
 0x1f8   :  { %213 = vrsqrt.f32 %v145_v35  ;;  %v144_v37 = vmul.f32 0.03125, %v142_v36 }
 0x1fa   :  { %v146_v38 = vadd.f32 1e-06, %v144_v37 }
 0x1fc   :  { %215 = vrsqrt.f32 %v146_v38 }
 0x205   :  { %v214_v39 = vpop.eup %213 }
 0x206   :  { %v149_v41 = vmul.f32 %v214_v39, %v133_v25 }
 0x208   :  { %v158_v43 = vmul.f32 %v192_v40, %v149_v41 }
 0x209   :  { %v216_v44 = vpop.eup %215 }
 0x20a   :  { %v150_v45 = vmul.f32 %v216_v44, %v134_v29  ;;  %v167_v46 = vadd.f32 %v193_v42, %v158_v43 }
 0x20c   :  { %v159_v47 = vmul.f32 %v192_v40, %v150_v45  ;;  %169 = vst.msk [vmem:[#allocation3] sm:$0xff] %vm29_vm1, %v167_v46 }
 0x20e   :  { %v168_v48 = vadd.f32 %v193_v42, %v159_v47 }
 0x210   :  { %170 = vst.msk [vmem:[#allocation3 + $0x8] sm:$0xff] %vm29_vm1, %v168_v48 }
 0x211   :  { %228 = shalt.err (!%p225_p4)
}
 0x212   :  { %s242_s4 = smov 128   ;;  %s243_s5 = smov 8  }
 0x213   :  { %182 = dma.vmem_to_hbm [thread:$0]  %s177_s10, 256, %s323_s6, [#allocation4], %s242_s4, %s242_s4, %s243_s5  }
 0x214   :  { %237 = dma.done.wait [#allocation4], 256  }
 0x215   :  { %238 = vsyncadd [#allocation4], 4294967040 }
 0x216   :  { %186 = vsyncpa [#allocation4], 1 }

// kernel: stander_encoder_forward.16
= control target key start
LH: loop header
LB: loop body
LE: loop exit
PB: predicated region body
PF: predicated region fallthrough
CT: control target
= control target key end

     0   :  { %vm28_vm0 = vcmask 261120   ;;  %v201_v0 = vmov 0.0   ;;  %vm202_vm1 = vmmov 0   ;;  %s279_s1 = inlined_call_operand.vmem [shape: bf16[32,32], index: 1, kind: input, shape index: {}]   ;;  %s280_s0 = inlined_call_operand.vmem [shape: bf16[16,32], index: 0, kind: input, shape index: {}]   ;;  %s281_s2 = inlined_call_operand.vmem [shape: f32[1,32], index: 2, kind: input, shape index: {}]   ;;  %s282_s3 = inlined_call_operand.vmem [shape: f32[16,32], index: 3, kind: input, shape index: {}]   ;;  %s283_s4 = inlined_call_operand.vmem [shape: f32[1,32], index: 4, kind: input, shape index: {}]   ;;  %s284_s5 = inlined_call_operand.vmem [shape: f32[1,32], index: 5, kind: input, shape index: {}]   ;;  %s285_s6 = inlined_call_operand.vmem [shape: f32[16,32], index: 6, kind: output, shape index: {}]  }
   0x1   :  { %184 = vmatprep.subr.bf16.mxu0 %v201_v0  ;;  %v194_v1 = vld [vmem:[%s279_s1 + $0x8] sm:$0xff]   ;;  %188 = vmatprep.mubr.msk.bf16.mxu0 %vm202_vm1, %v201_v0  ;;  %29 = vst.msk [vmem:[#allocation2] sm:$0xff] %vm28_vm0, %v201_v0  ;;  %30 = vst.msk [vmem:[#allocation2 + $0x8] sm:$0xff] %vm28_vm0, %v201_v0  ;;  %v195_v2 = vld [vmem:[%s279_s1] sm:$0xff]  }
   0x2   :  { %185 = vmatpush3.bf16.msra.mxu0 %v194_v1  ;;  %v196_v3 = vld [vmem:[%s280_s0] sm:$0xff]   ;;  %v120_v18 = vld [vmem:[%s282_s3 + $0x8] sm:$0xff] }
   0x3   :  { %186 = vmatprep.subr.bf16.mxu0 %v201_v0  ;;  %v178_v12 = vld [vmem:[%s281_s2] ss:$0 sm:$0xff] }
   0x4   :  { %v119_v14 = vld [vmem:[%s282_s3] sm:$0xff] }
   0x5   :  { %v179_v40 = vld [vmem:[%s283_s4] ss:$0 sm:$0xff] }
   0x6   :  { %187 = vmatpush3.bf16.msra.mxu0 %v195_v2  ;;  %v180_v42 = vld [vmem:[%s284_s5] ss:$0 sm:$0xff] }
   0x8   :  { %v31_v4 = vld [vmem:[#allocation2] sm:$0xff]  ;;  %v32_v8 = vld [vmem:[#allocation2 + $0x8] sm:$0xff] }
   0x9   :  { %189 = vmatmul.mubr.msk.bf16.vlgmr.msra.gmra.mxu0 %vm28_vm0, %v196_v3 }
  0xc9   :  { %v94_v5 = vpop.f32.mrf.mxu0 }
  0xca   :  { %v101_v6 = vadd.f32 %v94_v5, %v31_v4 }
  0xcb   :  { %v190_v7 = vpop.f32.mrf.mxu0 }
  0xcc   :  { %103 = vst.msk [vmem:[#allocation2] sm:$0xff] %vm28_vm0, %v101_v6 }
  0xcd   :  { %v97_v9 = vpop.f32.mrf.mxu0 }
  0xce   :  { %v102_v10 = vadd.f32 %v97_v9, %v32_v8 }
  0xcf   :  { %v191_v11 = vpop.f32.mrf.mxu0 }
  0xd0   :  { %104 = vst.msk [vmem:[#allocation2 + $0x8] sm:$0xff] %vm28_vm0, %v102_v10 }
  0xd3   :  { %v108_v13 = vld [vmem:[#allocation2] sm:$0xff] }
  0xd4   :  { %v117_v15 = vadd.f32 %v178_v12, %v108_v13 }
  0xd6   :  { %v121_v16 = vadd.f32 %v119_v14, %v117_v15 }
  0xd7   :  { %v109_v17 = vld [vmem:[#allocation2 + $0x8] sm:$0xff] }
  0xd8   :  { %v123_v19 = vsel %vm28_vm0, %v121_v16, 0.0  ;;  %v118_v20 = vadd.f32 %v178_v12, %v109_v17 }
  0xd9   :  { %124 = vadd.xlane.f32.xlu0 %v123_v19 }
  0xda   :  { %v122_v21 = vadd.f32 %v120_v18, %v118_v20 }
  0xdc   :  { %v126_v22 = vsel %vm28_vm0, %v122_v21, 0.0 }
  0xdd   :  { %127 = vadd.xlane.f32.xlu0 %v126_v22 }
 0x162   :  { %v125_v23 = vpop.xlane.xlu0 %124 }
 0x163   :  { %v130_v24 = vmul.f32 0.03125, %v125_v23 }
 0x165   :  { %v132_v25 = vsub.f32 %v121_v16, %v130_v24 }
 0x166   :  { %v128_v26 = vpop.xlane.xlu0 %127 }
 0x167   :  { %v131_v27 = vmul.f32 0.03125, %v128_v26  ;;  %v134_v28 = vmul.f32 %v132_v25, %v132_v25 }
 0x169   :  { %v133_v29 = vsub.f32 %v122_v21, %v131_v27  ;;  %v136_v30 = vsel %vm28_vm0, %v134_v28, 0.0 }
 0x16a   :  { %137 = vadd.xlane.f32.xlu1 %v136_v30 }
 0x16b   :  { %v135_v31 = vmul.f32 %v133_v29, %v133_v29 }
 0x16d   :  { %v139_v32 = vsel %vm28_vm0, %v135_v31, 0.0 }
 0x16e   :  { %140 = vadd.xlane.f32.xlu1 %v139_v32 }
 0x1f3   :  { %v138_v33 = vpop.xlane.xlu1 %137 }
 0x1f4   :  { %v142_v34 = vmul.f32 0.03125, %v138_v33 }
 0x1f6   :  { %v144_v35 = vadd.f32 1e-06, %v142_v34 }
 0x1f7   :  { %v141_v36 = vpop.xlane.xlu1 %140 }
 0x1f8   :  { %197 = vrsqrt.f32 %v144_v35  ;;  %v143_v37 = vmul.f32 0.03125, %v141_v36 }
 0x1fa   :  { %v145_v38 = vadd.f32 1e-06, %v143_v37 }
 0x1fc   :  { %199 = vrsqrt.f32 %v145_v38 }
 0x205   :  { %v198_v39 = vpop.eup %197 }
 0x206   :  { %v148_v41 = vmul.f32 %v198_v39, %v132_v25 }
 0x208   :  { %v157_v43 = vmul.f32 %v179_v40, %v148_v41 }
 0x209   :  { %v200_v44 = vpop.eup %199 }
 0x20a   :  { %v166_v45 = vadd.f32 %v180_v42, %v157_v43  ;;  %v149_v46 = vmul.f32 %v200_v44, %v133_v29 }
 0x20c   :  { %168 = vst.msk [vmem:[%s285_s6] sm:$0xff] %vm28_vm0, %v166_v45  ;;  %v158_v47 = vmul.f32 %v179_v40, %v149_v46 }
 0x20e   :  { %v167_v48 = vadd.f32 %v180_v42, %v158_v47 }
 0x210   :  { %169 = vst.msk [vmem:[%s285_s6 + $0x8] sm:$0xff] %vm28_vm0, %v167_v48 }

// kernel: stander_encoder_forward.15
= control target key start
LH: loop header
LB: loop body
LE: loop exit
PB: predicated region body
PF: predicated region fallthrough
CT: control target
= control target key end

     0   :  { %vm19_vm0 = vcmask 261120   ;;  %v146_v0 = vmov 0.0   ;;  %vm147_vm1 = vmmov 0   ;;  %vm116_vm2 = vcmask 257024   ;;  %s194_s1 = inlined_call_operand.vmem [shape: bf16[32,32], index: 1, kind: input, shape index: {}]   ;;  %s195_s0 = inlined_call_operand.vmem [shape: f32[16,32], index: 0, kind: input, shape index: {}]   ;;  %s196_s2 = inlined_call_operand.vmem [shape: f32[1,32], index: 2, kind: input, shape index: {}]   ;;  %s197_s3 = inlined_call_operand.vmem [shape: bf16[16,32], index: 3, kind: output, shape index: {}]  }
   0x1   :  { %134 = vmatprep.subr.bf16.mxu0 %v146_v0  ;;  %v144_v1 = vld [vmem:[%s194_s1 + $0x8] sm:$0xff]   ;;  %138 = vmatprep.mubr.msk.bf16.mxu0 %vm147_vm1, %v146_v0  ;;  %20 = vst.msk [vmem:[#allocation2] sm:$0xff] %vm19_vm0, %v146_v0  ;;  %21 = vst.msk [vmem:[#allocation2 + $0x8] sm:$0xff] %vm19_vm0, %v146_v0  ;;  %v145_v2 = vld [vmem:[%s194_s1] sm:$0xff]  }
   0x2   :  { %135 = vmatpush3.bf16.msra.mxu0 %v144_v1  ;;  %v24_v3 = vld [vmem:[%s195_s0] sm:$0xff]  ;;  %v25_v4 = vld [vmem:[%s195_s0 + $0x8] sm:$0xff] }
   0x3   :  { %136 = vmatprep.subr.bf16.mxu0 %v146_v0  ;;  %v26_v5 = vpack.c.bf16 %v25_v4, %v24_v3  ;;  %v126_v14 = vld [vmem:[%s196_s2] ss:$0 sm:$0xff] }
   0x6   :  { %137 = vmatpush3.bf16.msra.mxu0 %v145_v2 }
   0x8   :  { %v22_v6 = vld [vmem:[#allocation2] sm:$0xff]  ;;  %v23_v10 = vld [vmem:[#allocation2 + $0x8] sm:$0xff] }
   0x9   :  { %139 = vmatmul.mubr.msk.bf16.vlgmr.msra.gmra.mxu0 %vm19_vm0, %v26_v5 }
  0xc9   :  { %v81_v7 = vpop.f32.mrf.mxu0 }
  0xca   :  { %v88_v8 = vadd.f32 %v81_v7, %v22_v6 }
  0xcb   :  { %v140_v9 = vpop.f32.mrf.mxu0 }
  0xcc   :  { %90 = vst.msk [vmem:[#allocation2] sm:$0xff] %vm19_vm0, %v88_v8 }
  0xcd   :  { %v84_v11 = vpop.f32.mrf.mxu0 }
  0xce   :  { %v89_v12 = vadd.f32 %v84_v11, %v23_v10 }
  0xcf   :  { %v141_v13 = vpop.f32.mrf.mxu0 }
  0xd0   :  { %91 = vst.msk [vmem:[#allocation2 + $0x8] sm:$0xff] %vm19_vm0, %v89_v12 }
  0xd3   :  { %v95_v15 = vld [vmem:[#allocation2] sm:$0xff] }
  0xd4   :  { %v104_v16 = vadd.f32 %v126_v14, %v95_v15 }
  0xd6   :  { %v106_v17 = vmax.f32 %v104_v16, 0.0 }
  0xd7   :  { %v96_v18 = vld [vmem:[#allocation2 + $0x8] sm:$0xff] }
  0xd8   :  { %v129_v19 = vpack.c.bf16 %v106_v17, %v106_v17  ;;  %v105_v20 = vadd.f32 %v126_v14, %v96_v18 }
  0xda   :  { %117 = vst.msk [vmem:[%s197_s3] sm:$0xf] %vm116_vm2, %v129_v19  ;;  %v107_v21 = vmax.f32 %v105_v20, 0.0 }
  0xdc   :  { %v130_v22 = vpack.c.bf16 %v107_v21, %v107_v21 }
  0xde   :  { %118 = vst.msk [vmem:[%s197_s3 + $0x4] sm:$0xf] %vm116_vm2, %v130_v22 }

</bundles_post_ra>
